<compile_context>
chip_gen: v5e
topology: v5e:2x2
jax: 0.10.0
libtpu: 0.0.40
codegen_flags: <defaults>
</compile_context>

<pallas_src>
import math

import jax
import jax.numpy as jnp
from jax.experimental import pallas as pl
from jax.experimental.pallas import tpu as pltpu


def _round_up(x, m):
    return ((x + m - 1) // m) * m


def _sigmoid1(x):
    # sigmoid(x) = 0.5 * (1 + tanh(x/2)) : a single EUP push per gate.
    return 0.5 * (jnp.tanh(0.5 * x) + 1.0)


def speech_encoder_bottom_kernel(xg_ref, wf_ref, bf_ref, wh_ref, out_ref):
    """One batch block of the fused Conv1d + LSTM forward.

    xg_ref : (T_out, B_blk, KDin_p)  time-major im2col slab of x at strided conv positions
    wf_ref : (KDin_p, 4*H_p)         conv weights folded through W_ih^T, gate-padded [i|f|g|o]
    bf_ref : (1, 4*H_p)              folded bias (bc @ W_ih^T + b_ih + b_hh), gate-padded
    wh_ref : (H_p, 4*H_p)            W_hh^T, zero-padded rows, gate-padded cols
    out_ref: (T_out, B_blk, H_p)     time-major hidden-state sequence (lane-dense stores)
    """
    T_out, B, KDin = xg_ref.shape
    Hp4 = wf_ref.shape[1]
    Hp = Hp4 // 4
    f32 = jnp.float32

    # ---- Feed-forward path hoisted out of the recurrence: ONE im2col matmul ----
    x2 = xg_ref[...].reshape(T_out * B, KDin)
    gx = jnp.dot(x2, wf_ref[...], preferred_element_type=f32) + bf_ref[...]
    gx = gx.reshape(T_out, B, Hp4)

    # ---- Serial recurrence: one fused (Hp, 4Hp) hidden matmul + gate math per step ----
    wh = wh_ref[...]
    h = jnp.zeros((B, Hp), f32)
    c = jnp.zeros((B, Hp), f32)
    for t in range(T_out):                               # small static trip count
        g = gx[t] + jnp.dot(h, wh, preferred_element_type=f32)   # (B, 4Hp)
        i_g = _sigmoid1(g[:, 0 * Hp:1 * Hp])             # 128-lane-aligned gate tiles
        f_g = _sigmoid1(g[:, 1 * Hp:2 * Hp])
        c_g = jnp.tanh(g[:, 2 * Hp:3 * Hp])
        o_g = _sigmoid1(g[:, 3 * Hp:4 * Hp])
        c = f_g * c + i_g * c_g
        h = o_g * jnp.tanh(c)
        out_ref[t] = h.astype(out_ref.dtype)             # lane-dense per-step store


def pack_params(raw, *, lane=128):
    """Fold Conv1d into the LSTM input projection and gate-pad everything to `lane` lanes."""
    w_conv, b_conv = raw["w_conv"], raw["b_conv"]        # (Cout, Din, K), (Cout,)
    w_ih, w_hh = raw["w_ih"], raw["w_hh"]                # (4H, Cout), (4H, H)
    b_ih, b_hh = raw["b_ih"], raw["b_hh"]                # (4H,), (4H,)
    Cout, Din, K = w_conv.shape
    H = w_hh.shape[1]
    Hp = _round_up(H, lane)
    KDin_p = _round_up(K * Din, lane)

    def gate_pad(m):                                     # (..., 4H) -> (..., 4Hp), zero pad per gate
        blocks = [m[..., q * H:(q + 1) * H] for q in range(4)]
        pad = [(0, 0)] * (m.ndim - 1) + [(0, Hp - H)]
        return jnp.concatenate([jnp.pad(b, pad) for b in blocks], axis=-1)

    # Per-tap conv weights (K, Din, Cout) folded through W_ih^T -> (K*Din, 4H); exact (no relu).
    wc = jnp.transpose(w_conv, (2, 1, 0)).reshape(K * Din, Cout)
    wf = gate_pad(wc @ w_ih.T)                                    # (K*Din, 4Hp)
    wf = jnp.pad(wf, ((0, KDin_p - K * Din), (0, 0)))             # (KDin_p, 4Hp)
    bf = gate_pad(b_conv @ w_ih.T + b_ih + b_hh)[None, :]         # (1, 4Hp)
    wh = gate_pad(w_hh.T)                                         # (H, 4Hp)
    wh = jnp.pad(wh, ((0, Hp - H), (0, 0)))                       # (Hp, 4Hp)
    return dict(wf=wf, bf=bf, wh=wh, K=K, Din=Din, H=H, Hp=Hp, KDin_p=KDin_p)


def _pick_batch_block(batch):
    for cand in (64, 32, 16, 8):                         # multiples of 8 keep blocks sublane-aligned
        if batch % cand == 0:
            return cand
    return batch                                         # small / ragged batch: single block


def speech_encoder_bottom(x, x_len, packed, *, stride=2):
    """x: (B, T, size_vocab) float32, batch-first.  x_len unused (matches the PyTorch forward)."""
    del x_len
    B, T, Din = x.shape
    K, H, Hp, KDin_p = packed["K"], packed["H"], packed["Hp"], packed["KDin_p"]
    assert Din == packed["Din"]
    T_out = (T - K) // stride + 1

    # Lane-dense, time-major im2col slab at the strided conv positions only (layout plumbing).
    t_idx = stride * jnp.arange(T_out)[:, None] + jnp.arange(K)[None, :]      # (T_out, K)
    slab = jnp.transpose(x[:, t_idx, :], (1, 0, 2, 3)).reshape(T_out, B, K * Din)
    slab = jnp.pad(slab, ((0, 0), (0, 0), (0, KDin_p - K * Din))).astype(jnp.float32)

    b_blk = _pick_batch_block(B)
    grid = (B // b_blk,)

    out_tbh = pl.pallas_call(
        speech_encoder_bottom_kernel,
        out_shape=jax.ShapeDtypeStruct((T_out, B, Hp), jnp.float32),
        grid=grid,
        in_specs=[
            pl.BlockSpec((T_out, b_blk, KDin_p), lambda b: (0, b, 0)),
            pl.BlockSpec((KDin_p, 4 * Hp), lambda b: (0, 0)),   # weights: resident across blocks
            pl.BlockSpec((1, 4 * Hp), lambda b: (0, 0)),
            pl.BlockSpec((Hp, 4 * Hp), lambda b: (0, 0)),
        ],
        out_specs=pl.BlockSpec((T_out, b_blk, Hp), lambda b: (0, b, 0)),
        compiler_params=pltpu.CompilerParams(
            dimension_semantics=("parallel",),
            vmem_limit_bytes=32 * 1024 * 1024,
        ),
    )(slab, packed["wf"], packed["bf"], packed["wh"])

    # PyTorch LSTM(batch_first=True) returns (B, T_out, H): strip lane padding, transpose small result.
    return jnp.transpose(out_tbh[:, :, :H], (1, 0, 2))


def init_params(key, size_vocab, size, filter_length=6, filter_size=64):
    """Deterministic synthetic parameters in PyTorch layouts."""
    Din, H, K, Cout = size_vocab, size, filter_length, filter_size
    keys = jax.random.split(key, 6)

    def u(k, shape, scale):
        return jax.random.uniform(k, shape, jnp.float32, -scale, scale)

    sc = 1.0 / math.sqrt(Din * K)
    s = 1.0 / math.sqrt(H)
    return dict(
        w_conv=u(keys[0], (Cout, Din, K), sc),           # Conv1d weight
        b_conv=u(keys[1], (Cout,), sc),                  # Conv1d bias
        w_ih=u(keys[2], (4 * H, Cout), s),               # LSTM weight_ih_l0, gates [i|f|g|o]
        w_hh=u(keys[3], (4 * H, H), s),                  # LSTM weight_hh_l0
        b_ih=u(keys[4], (4 * H,), s),
        b_hh=u(keys[5], (4 * H,), s),
    )


def reference_forward(x, raw, *, stride=2):
    """Pure-JAX reference mirroring the PyTorch forward op-for-op (raw torch-layout params)."""
    w_conv, b_conv = raw["w_conv"], raw["b_conv"]
    w_ih, w_hh, b_ih, b_hh = raw["w_ih"], raw["w_hh"], raw["b_ih"], raw["b_hh"]
    Cout, Din, K = w_conv.shape
    H = w_hh.shape[1]
    B, T, _ = x.shape
    T_out = (T - K) // stride + 1

    conv = jnp.stack(
        [sum(x[:, stride * t + k, :] @ w_conv[:, :, k].T for k in range(K)) for t in range(T_out)],
        axis=1,
    ) + b_conv                                           # (B, T_out, Cout)

    h = jnp.zeros((B, H), jnp.float32)
    c = jnp.zeros((B, H), jnp.float32)
    outs = []
    for t in range(T_out):
        g = conv[:, t, :] @ w_ih.T + h @ w_hh.T + b_ih + b_hh
        i = jax.nn.sigmoid(g[:, :H])
        f = jax.nn.sigmoid(g[:, H:2 * H])
        gg = jnp.tanh(g[:, 2 * H:3 * H])
        o = jax.nn.sigmoid(g[:, 3 * H:])
        c = f * c + i * gg
        h = o * jnp.tanh(c)
        outs.append(h)
    return jnp.stack(outs, axis=1)                       # (B, T_out, H)


if __name__ == "__main__":
    B, T = 2, 20
    size_vocab, size = 13, 32
    filter_length, filter_size, stride = 6, 64, 2

    key = jax.random.PRNGKey(0)
    k_x, k_p = jax.random.split(key)
    x = jax.random.normal(k_x, (B, T, size_vocab), jnp.float32)
    x_len = jnp.full((B,), T, jnp.int32)                 # unused by the forward (matches PyTorch)

    raw = init_params(k_p, size_vocab, size, filter_length, filter_size)
    packed = pack_params(raw)

    y = speech_encoder_bottom(x, x_len, packed, stride=stride)
    y = jax.block_until_ready(y)

    y_ref = reference_forward(x, raw, stride=stride)
    T_out = (T - filter_length) // stride + 1
    assert y.shape == (B, T_out, size), y.shape
    err = jnp.max(jnp.abs(y - y_ref))
    assert jnp.allclose(y, y_ref, rtol=1e-3, atol=1e-3), f"mismatch: max abs err {err}"
    print("KERNEL_OK")
</pallas_src>

<mosaic_0001>
module attributes {stable_mosaic.version = 11 : i64} {
  func.func @speech_encoder_bottom_kernel(%arg0: i32, %arg1: memref<8x2x128xf32, #tpu.memory_space<vmem>>, %arg2: memref<128x512xf32, #tpu.memory_space<vmem>>, %arg3: memref<1x512xf32, #tpu.memory_space<vmem>>, %arg4: memref<128x512xf32, #tpu.memory_space<vmem>>, %arg5: memref<8x2x128xf32, #tpu.memory_space<vmem>>) attributes {dimension_semantics = [#tpu.dimension_semantics<parallel>], iteration_bounds = array<i64: 1>, scalar_prefetch = 0 : i64, scratch_operands = 0 : i64, tpu.core_type = #tpu.core_type<tc>, window_params = [{transform_indices = @transform_0, window_bounds = array<i64: 8, 2, 128>}, {pipeline_mode = #tpu.pipeline_mode<synchronous>, transform_indices = @transform_1, window_bounds = array<i64: 128, 512>}, {pipeline_mode = #tpu.pipeline_mode<synchronous>, transform_indices = @transform_2, window_bounds = array<i64: 1, 512>}, {pipeline_mode = #tpu.pipeline_mode<synchronous>, transform_indices = @transform_3, window_bounds = array<i64: 128, 512>}, {transform_indices = @transform_4, window_bounds = array<i64: 8, 2, 128>}]} {
    %c0 = arith.constant 0 : index
    %c0_0 = arith.constant 0 : index
    %c0_1 = arith.constant 0 : index
    %0 = vector.load %arg1[%c0, %c0_0, %c0_1] : memref<8x2x128xf32, #tpu.memory_space<vmem>>, vector<8x2x128xf32>
    %1 = vector.shape_cast %0 : vector<8x2x128xf32> to vector<16x128xf32>
    %c0_2 = arith.constant 0 : index
    %c0_3 = arith.constant 0 : index
    %2 = vector.load %arg2[%c0_2, %c0_3] : memref<128x512xf32, #tpu.memory_space<vmem>>, vector<128x512xf32>
    %cst = arith.constant dense<0.000000e+00> : vector<16x512xf32>
    %3 = tpu.matmul %1, %2, %cst {dimension_numbers = #tpu.dot_dimension_numbers<[1], [0], [0], [1], [0, 0, 1, 1], [], []>} : vector<16x128xf32>, vector<128x512xf32>, vector<16x512xf32> -> vector<16x512xf32>
    %c0_4 = arith.constant 0 : index
    %c0_5 = arith.constant 0 : index
    %4 = vector.load %arg3[%c0_4, %c0_5] : memref<1x512xf32, #tpu.memory_space<vmem>>, vector<1x512xf32>
    %5 = vector.broadcast %4 : vector<1x512xf32> to vector<16x512xf32>
    %6 = arith.addf %3, %5 : vector<16x512xf32>
    %7 = vector.shape_cast %6 : vector<16x512xf32> to vector<8x2x512xf32>
    %c0_6 = arith.constant 0 : index
    %c0_7 = arith.constant 0 : index
    %8 = vector.load %arg4[%c0_6, %c0_7] : memref<128x512xf32, #tpu.memory_space<vmem>>, vector<128x512xf32>
    %cst_8 = arith.constant 0.000000e+00 : f32
    %9 = vector.broadcast %cst_8 : f32 to vector<2x128xf32>
    %cst_9 = arith.constant 0.000000e+00 : f32
    %10 = vector.broadcast %cst_9 : f32 to vector<2x128xf32>
    %11 = vector.extract_strided_slice %7 {offsets = [0, 0, 0], sizes = [1, 2, 512], strides = [1, 1, 1]} : vector<8x2x512xf32> to vector<1x2x512xf32>
    %12 = vector.shape_cast %11 : vector<1x2x512xf32> to vector<2x512xf32>
    %cst_10 = arith.constant dense<0.000000e+00> : vector<2x512xf32>
    %13 = tpu.matmul %9, %8, %cst_10 {dimension_numbers = #tpu.dot_dimension_numbers<[1], [0], [0], [1], [0, 0, 1, 1], [], []>} : vector<2x128xf32>, vector<128x512xf32>, vector<2x512xf32> -> vector<2x512xf32>
    %14 = arith.addf %12, %13 : vector<2x512xf32>
    %15 = vector.extract_strided_slice %14 {offsets = [0, 0], sizes = [2, 128], strides = [1, 1]} : vector<2x512xf32> to vector<2x128xf32>
    %cst_11 = arith.constant 5.000000e-01 : f32
    %16 = vector.broadcast %cst_11 : f32 to vector<2x128xf32>
    %17 = arith.mulf %16, %15 : vector<2x128xf32>
    %18 = math.tanh %17 : vector<2x128xf32>
    %cst_12 = arith.constant 1.000000e+00 : f32
    %19 = vector.broadcast %cst_12 : f32 to vector<2x128xf32>
    %20 = arith.addf %18, %19 : vector<2x128xf32>
    %cst_13 = arith.constant 5.000000e-01 : f32
    %21 = vector.broadcast %cst_13 : f32 to vector<2x128xf32>
    %22 = arith.mulf %21, %20 : vector<2x128xf32>
    %23 = vector.extract_strided_slice %14 {offsets = [0, 128], sizes = [2, 128], strides = [1, 1]} : vector<2x512xf32> to vector<2x128xf32>
    %cst_14 = arith.constant 5.000000e-01 : f32
    %24 = vector.broadcast %cst_14 : f32 to vector<2x128xf32>
    %25 = arith.mulf %24, %23 : vector<2x128xf32>
    %26 = math.tanh %25 : vector<2x128xf32>
    %cst_15 = arith.constant 1.000000e+00 : f32
    %27 = vector.broadcast %cst_15 : f32 to vector<2x128xf32>
    %28 = arith.addf %26, %27 : vector<2x128xf32>
    %cst_16 = arith.constant 5.000000e-01 : f32
    %29 = vector.broadcast %cst_16 : f32 to vector<2x128xf32>
    %30 = arith.mulf %29, %28 : vector<2x128xf32>
    %31 = vector.extract_strided_slice %14 {offsets = [0, 256], sizes = [2, 128], strides = [1, 1]} : vector<2x512xf32> to vector<2x128xf32>
    %32 = math.tanh %31 : vector<2x128xf32>
    %33 = vector.extract_strided_slice %14 {offsets = [0, 384], sizes = [2, 128], strides = [1, 1]} : vector<2x512xf32> to vector<2x128xf32>
    %cst_17 = arith.constant 5.000000e-01 : f32
    %34 = vector.broadcast %cst_17 : f32 to vector<2x128xf32>
    %35 = arith.mulf %34, %33 : vector<2x128xf32>
    %36 = math.tanh %35 : vector<2x128xf32>
    %cst_18 = arith.constant 1.000000e+00 : f32
    %37 = vector.broadcast %cst_18 : f32 to vector<2x128xf32>
    %38 = arith.addf %36, %37 : vector<2x128xf32>
    %cst_19 = arith.constant 5.000000e-01 : f32
    %39 = vector.broadcast %cst_19 : f32 to vector<2x128xf32>
    %40 = arith.mulf %39, %38 : vector<2x128xf32>
    %41 = arith.mulf %30, %10 : vector<2x128xf32>
    %42 = arith.mulf %22, %32 : vector<2x128xf32>
    %43 = arith.addf %41, %42 : vector<2x128xf32>
    %44 = math.tanh %43 : vector<2x128xf32>
    %45 = arith.mulf %40, %44 : vector<2x128xf32>
    %c0_20 = arith.constant 0 : index
    %c0_21 = arith.constant 0 : index
    %c0_22 = arith.constant 0 : index
    %46 = vector.load %arg5[%c0_20, %c0_21, %c0_22] : memref<8x2x128xf32, #tpu.memory_space<vmem>>, vector<1x2x128xf32>
    %47 = vector.shape_cast %46 : vector<1x2x128xf32> to vector<2x128xf32>
    %48 = vector.shape_cast %45 : vector<2x128xf32> to vector<1x2x128xf32>
    tpu.vector_store %arg5[%c0_20, %c0_21, %c0_22], %48 {strides = array<i32>} : memref<8x2x128xf32, #tpu.memory_space<vmem>>, vector<1x2x128xf32>,
    %49 = vector.extract_strided_slice %7 {offsets = [1, 0, 0], sizes = [1, 2, 512], strides = [1, 1, 1]} : vector<8x2x512xf32> to vector<1x2x512xf32>
    %50 = vector.shape_cast %49 : vector<1x2x512xf32> to vector<2x512xf32>
    %cst_23 = arith.constant dense<0.000000e+00> : vector<2x512xf32>
    %51 = tpu.matmul %45, %8, %cst_23 {dimension_numbers = #tpu.dot_dimension_numbers<[1], [0], [0], [1], [0, 0, 1, 1], [], []>} : vector<2x128xf32>, vector<128x512xf32>, vector<2x512xf32> -> vector<2x512xf32>
    %52 = arith.addf %50, %51 : vector<2x512xf32>
    %53 = vector.extract_strided_slice %52 {offsets = [0, 0], sizes = [2, 128], strides = [1, 1]} : vector<2x512xf32> to vector<2x128xf32>
    %cst_24 = arith.constant 5.000000e-01 : f32
    %54 = vector.broadcast %cst_24 : f32 to vector<2x128xf32>
    %55 = arith.mulf %54, %53 : vector<2x128xf32>
    %56 = math.tanh %55 : vector<2x128xf32>
    %cst_25 = arith.constant 1.000000e+00 : f32
    %57 = vector.broadcast %cst_25 : f32 to vector<2x128xf32>
    %58 = arith.addf %56, %57 : vector<2x128xf32>
    %cst_26 = arith.constant 5.000000e-01 : f32
    %59 = vector.broadcast %cst_26 : f32 to vector<2x128xf32>
    %60 = arith.mulf %59, %58 : vector<2x128xf32>
    %61 = vector.extract_strided_slice %52 {offsets = [0, 128], sizes = [2, 128], strides = [1, 1]} : vector<2x512xf32> to vector<2x128xf32>
    %cst_27 = arith.constant 5.000000e-01 : f32
    %62 = vector.broadcast %cst_27 : f32 to vector<2x128xf32>
    %63 = arith.mulf %62, %61 : vector<2x128xf32>
    %64 = math.tanh %63 : vector<2x128xf32>
    %cst_28 = arith.constant 1.000000e+00 : f32
    %65 = vector.broadcast %cst_28 : f32 to vector<2x128xf32>
    %66 = arith.addf %64, %65 : vector<2x128xf32>
    %cst_29 = arith.constant 5.000000e-01 : f32
    %67 = vector.broadcast %cst_29 : f32 to vector<2x128xf32>
    %68 = arith.mulf %67, %66 : vector<2x128xf32>
    %69 = vector.extract_strided_slice %52 {offsets = [0, 256], sizes = [2, 128], strides = [1, 1]} : vector<2x512xf32> to vector<2x128xf32>
    %70 = math.tanh %69 : vector<2x128xf32>
    %71 = vector.extract_strided_slice %52 {offsets = [0, 384], sizes = [2, 128], strides = [1, 1]} : vector<2x512xf32> to vector<2x128xf32>
    %cst_30 = arith.constant 5.000000e-01 : f32
    %72 = vector.broadcast %cst_30 : f32 to vector<2x128xf32>
    %73 = arith.mulf %72, %71 : vector<2x128xf32>
    %74 = math.tanh %73 : vector<2x128xf32>
    %cst_31 = arith.constant 1.000000e+00 : f32
    %75 = vector.broadcast %cst_31 : f32 to vector<2x128xf32>
    %76 = arith.addf %74, %75 : vector<2x128xf32>
    %cst_32 = arith.constant 5.000000e-01 : f32
    %77 = vector.broadcast %cst_32 : f32 to vector<2x128xf32>
    %78 = arith.mulf %77, %76 : vector<2x128xf32>
    %79 = arith.mulf %68, %43 : vector<2x128xf32>
    %80 = arith.mulf %60, %70 : vector<2x128xf32>
    %81 = arith.addf %79, %80 : vector<2x128xf32>
    %82 = math.tanh %81 : vector<2x128xf32>
    %83 = arith.mulf %78, %82 : vector<2x128xf32>
    %c1 = arith.constant 1 : index
    %c0_33 = arith.constant 0 : index
    %c0_34 = arith.constant 0 : index
    %84 = vector.load %arg5[%c1, %c0_33, %c0_34] : memref<8x2x128xf32, #tpu.memory_space<vmem>>, vector<1x2x128xf32>
    %85 = vector.shape_cast %84 : vector<1x2x128xf32> to vector<2x128xf32>
    %86 = vector.shape_cast %83 : vector<2x128xf32> to vector<1x2x128xf32>
    tpu.vector_store %arg5[%c1, %c0_33, %c0_34], %86 {strides = array<i32>} : memref<8x2x128xf32, #tpu.memory_space<vmem>>, vector<1x2x128xf32>,
    %87 = vector.extract_strided_slice %7 {offsets = [2, 0, 0], sizes = [1, 2, 512], strides = [1, 1, 1]} : vector<8x2x512xf32> to vector<1x2x512xf32>
    %88 = vector.shape_cast %87 : vector<1x2x512xf32> to vector<2x512xf32>
    %cst_35 = arith.constant dense<0.000000e+00> : vector<2x512xf32>
    %89 = tpu.matmul %83, %8, %cst_35 {dimension_numbers = #tpu.dot_dimension_numbers<[1], [0], [0], [1], [0, 0, 1, 1], [], []>} : vector<2x128xf32>, vector<128x512xf32>, vector<2x512xf32> -> vector<2x512xf32>
    %90 = arith.addf %88, %89 : vector<2x512xf32>
    %91 = vector.extract_strided_slice %90 {offsets = [0, 0], sizes = [2, 128], strides = [1, 1]} : vector<2x512xf32> to vector<2x128xf32>
    %cst_36 = arith.constant 5.000000e-01 : f32
    %92 = vector.broadcast %cst_36 : f32 to vector<2x128xf32>
    %93 = arith.mulf %92, %91 : vector<2x128xf32>
    %94 = math.tanh %93 : vector<2x128xf32>
    %cst_37 = arith.constant 1.000000e+00 : f32
    %95 = vector.broadcast %cst_37 : f32 to vector<2x128xf32>
    %96 = arith.addf %94, %95 : vector<2x128xf32>
    %cst_38 = arith.constant 5.000000e-01 : f32
    %97 = vector.broadcast %cst_38 : f32 to vector<2x128xf32>
    %98 = arith.mulf %97, %96 : vector<2x128xf32>
    %99 = vector.extract_strided_slice %90 {offsets = [0, 128], sizes = [2, 128], strides = [1, 1]} : vector<2x512xf32> to vector<2x128xf32>
    %cst_39 = arith.constant 5.000000e-01 : f32
    %100 = vector.broadcast %cst_39 : f32 to vector<2x128xf32>
    %101 = arith.mulf %100, %99 : vector<2x128xf32>
    %102 = math.tanh %101 : vector<2x128xf32>
    %cst_40 = arith.constant 1.000000e+00 : f32
    %103 = vector.broadcast %cst_40 : f32 to vector<2x128xf32>
    %104 = arith.addf %102, %103 : vector<2x128xf32>
    %cst_41 = arith.constant 5.000000e-01 : f32
    %105 = vector.broadcast %cst_41 : f32 to vector<2x128xf32>
    %106 = arith.mulf %105, %104 : vector<2x128xf32>
    %107 = vector.extract_strided_slice %90 {offsets = [0, 256], sizes = [2, 128], strides = [1, 1]} : vector<2x512xf32> to vector<2x128xf32>
    %108 = math.tanh %107 : vector<2x128xf32>
    %109 = vector.extract_strided_slice %90 {offsets = [0, 384], sizes = [2, 128], strides = [1, 1]} : vector<2x512xf32> to vector<2x128xf32>
    %cst_42 = arith.constant 5.000000e-01 : f32
    %110 = vector.broadcast %cst_42 : f32 to vector<2x128xf32>
    %111 = arith.mulf %110, %109 : vector<2x128xf32>
    %112 = math.tanh %111 : vector<2x128xf32>
    %cst_43 = arith.constant 1.000000e+00 : f32
    %113 = vector.broadcast %cst_43 : f32 to vector<2x128xf32>
    %114 = arith.addf %112, %113 : vector<2x128xf32>
    %cst_44 = arith.constant 5.000000e-01 : f32
    %115 = vector.broadcast %cst_44 : f32 to vector<2x128xf32>
    %116 = arith.mulf %115, %114 : vector<2x128xf32>
    %117 = arith.mulf %106, %81 : vector<2x128xf32>
    %118 = arith.mulf %98, %108 : vector<2x128xf32>
    %119 = arith.addf %117, %118 : vector<2x128xf32>
    %120 = math.tanh %119 : vector<2x128xf32>
    %121 = arith.mulf %116, %120 : vector<2x128xf32>
    %c2 = arith.constant 2 : index
    %c0_45 = arith.constant 0 : index
    %c0_46 = arith.constant 0 : index
    %122 = vector.load %arg5[%c2, %c0_45, %c0_46] : memref<8x2x128xf32, #tpu.memory_space<vmem>>, vector<1x2x128xf32>
    %123 = vector.shape_cast %122 : vector<1x2x128xf32> to vector<2x128xf32>
    %124 = vector.shape_cast %121 : vector<2x128xf32> to vector<1x2x128xf32>
    tpu.vector_store %arg5[%c2, %c0_45, %c0_46], %124 {strides = array<i32>} : memref<8x2x128xf32, #tpu.memory_space<vmem>>, vector<1x2x128xf32>,
    %125 = vector.extract_strided_slice %7 {offsets = [3, 0, 0], sizes = [1, 2, 512], strides = [1, 1, 1]} : vector<8x2x512xf32> to vector<1x2x512xf32>
    %126 = vector.shape_cast %125 : vector<1x2x512xf32> to vector<2x512xf32>
    %cst_47 = arith.constant dense<0.000000e+00> : vector<2x512xf32>
    %127 = tpu.matmul %121, %8, %cst_47 {dimension_numbers = #tpu.dot_dimension_numbers<[1], [0], [0], [1], [0, 0, 1, 1], [], []>} : vector<2x128xf32>, vector<128x512xf32>, vector<2x512xf32> -> vector<2x512xf32>
    %128 = arith.addf %126, %127 : vector<2x512xf32>
    %129 = vector.extract_strided_slice %128 {offsets = [0, 0], sizes = [2, 128], strides = [1, 1]} : vector<2x512xf32> to vector<2x128xf32>
    %cst_48 = arith.constant 5.000000e-01 : f32
    %130 = vector.broadcast %cst_48 : f32 to vector<2x128xf32>
    %131 = arith.mulf %130, %129 : vector<2x128xf32>
    %132 = math.tanh %131 : vector<2x128xf32>
    %cst_49 = arith.constant 1.000000e+00 : f32
    %133 = vector.broadcast %cst_49 : f32 to vector<2x128xf32>
    %134 = arith.addf %132, %133 : vector<2x128xf32>
    %cst_50 = arith.constant 5.000000e-01 : f32
    %135 = vector.broadcast %cst_50 : f32 to vector<2x128xf32>
    %136 = arith.mulf %135, %134 : vector<2x128xf32>
    %137 = vector.extract_strided_slice %128 {offsets = [0, 128], sizes = [2, 128], strides = [1, 1]} : vector<2x512xf32> to vector<2x128xf32>
    %cst_51 = arith.constant 5.000000e-01 : f32
    %138 = vector.broadcast %cst_51 : f32 to vector<2x128xf32>
    %139 = arith.mulf %138, %137 : vector<2x128xf32>
    %140 = math.tanh %139 : vector<2x128xf32>
    %cst_52 = arith.constant 1.000000e+00 : f32
    %141 = vector.broadcast %cst_52 : f32 to vector<2x128xf32>
    %142 = arith.addf %140, %141 : vector<2x128xf32>
    %cst_53 = arith.constant 5.000000e-01 : f32
    %143 = vector.broadcast %cst_53 : f32 to vector<2x128xf32>
    %144 = arith.mulf %143, %142 : vector<2x128xf32>
    %145 = vector.extract_strided_slice %128 {offsets = [0, 256], sizes = [2, 128], strides = [1, 1]} : vector<2x512xf32> to vector<2x128xf32>
    %146 = math.tanh %145 : vector<2x128xf32>
    %147 = vector.extract_strided_slice %128 {offsets = [0, 384], sizes = [2, 128], strides = [1, 1]} : vector<2x512xf32> to vector<2x128xf32>
    %cst_54 = arith.constant 5.000000e-01 : f32
    %148 = vector.broadcast %cst_54 : f32 to vector<2x128xf32>
    %149 = arith.mulf %148, %147 : vector<2x128xf32>
    %150 = math.tanh %149 : vector<2x128xf32>
    %cst_55 = arith.constant 1.000000e+00 : f32
    %151 = vector.broadcast %cst_55 : f32 to vector<2x128xf32>
    %152 = arith.addf %150, %151 : vector<2x128xf32>
    %cst_56 = arith.constant 5.000000e-01 : f32
    %153 = vector.broadcast %cst_56 : f32 to vector<2x128xf32>
    %154 = arith.mulf %153, %152 : vector<2x128xf32>
    %155 = arith.mulf %144, %119 : vector<2x128xf32>
    %156 = arith.mulf %136, %146 : vector<2x128xf32>
    %157 = arith.addf %155, %156 : vector<2x128xf32>
    %158 = math.tanh %157 : vector<2x128xf32>
    %159 = arith.mulf %154, %158 : vector<2x128xf32>
    %c3 = arith.constant 3 : index
    %c0_57 = arith.constant 0 : index
    %c0_58 = arith.constant 0 : index
    %160 = vector.load %arg5[%c3, %c0_57, %c0_58] : memref<8x2x128xf32, #tpu.memory_space<vmem>>, vector<1x2x128xf32>
    %161 = vector.shape_cast %160 : vector<1x2x128xf32> to vector<2x128xf32>
    %162 = vector.shape_cast %159 : vector<2x128xf32> to vector<1x2x128xf32>
    tpu.vector_store %arg5[%c3, %c0_57, %c0_58], %162 {strides = array<i32>} : memref<8x2x128xf32, #tpu.memory_space<vmem>>, vector<1x2x128xf32>,
    %163 = vector.extract_strided_slice %7 {offsets = [4, 0, 0], sizes = [1, 2, 512], strides = [1, 1, 1]} : vector<8x2x512xf32> to vector<1x2x512xf32>
    %164 = vector.shape_cast %163 : vector<1x2x512xf32> to vector<2x512xf32>
    %cst_59 = arith.constant dense<0.000000e+00> : vector<2x512xf32>
    %165 = tpu.matmul %159, %8, %cst_59 {dimension_numbers = #tpu.dot_dimension_numbers<[1], [0], [0], [1], [0, 0, 1, 1], [], []>} : vector<2x128xf32>, vector<128x512xf32>, vector<2x512xf32> -> vector<2x512xf32>
    %166 = arith.addf %164, %165 : vector<2x512xf32>
    %167 = vector.extract_strided_slice %166 {offsets = [0, 0], sizes = [2, 128], strides = [1, 1]} : vector<2x512xf32> to vector<2x128xf32>
    %cst_60 = arith.constant 5.000000e-01 : f32
    %168 = vector.broadcast %cst_60 : f32 to vector<2x128xf32>
    %169 = arith.mulf %168, %167 : vector<2x128xf32>
    %170 = math.tanh %169 : vector<2x128xf32>
    %cst_61 = arith.constant 1.000000e+00 : f32
    %171 = vector.broadcast %cst_61 : f32 to vector<2x128xf32>
    %172 = arith.addf %170, %171 : vector<2x128xf32>
    %cst_62 = arith.constant 5.000000e-01 : f32
    %173 = vector.broadcast %cst_62 : f32 to vector<2x128xf32>
    %174 = arith.mulf %173, %172 : vector<2x128xf32>
    %175 = vector.extract_strided_slice %166 {offsets = [0, 128], sizes = [2, 128], strides = [1, 1]} : vector<2x512xf32> to vector<2x128xf32>
    %cst_63 = arith.constant 5.000000e-01 : f32
    %176 = vector.broadcast %cst_63 : f32 to vector<2x128xf32>
    %177 = arith.mulf %176, %175 : vector<2x128xf32>
    %178 = math.tanh %177 : vector<2x128xf32>
    %cst_64 = arith.constant 1.000000e+00 : f32
    %179 = vector.broadcast %cst_64 : f32 to vector<2x128xf32>
    %180 = arith.addf %178, %179 : vector<2x128xf32>
    %cst_65 = arith.constant 5.000000e-01 : f32
    %181 = vector.broadcast %cst_65 : f32 to vector<2x128xf32>
    %182 = arith.mulf %181, %180 : vector<2x128xf32>
    %183 = vector.extract_strided_slice %166 {offsets = [0, 256], sizes = [2, 128], strides = [1, 1]} : vector<2x512xf32> to vector<2x128xf32>
    %184 = math.tanh %183 : vector<2x128xf32>
    %185 = vector.extract_strided_slice %166 {offsets = [0, 384], sizes = [2, 128], strides = [1, 1]} : vector<2x512xf32> to vector<2x128xf32>
    %cst_66 = arith.constant 5.000000e-01 : f32
    %186 = vector.broadcast %cst_66 : f32 to vector<2x128xf32>
    %187 = arith.mulf %186, %185 : vector<2x128xf32>
    %188 = math.tanh %187 : vector<2x128xf32>
    %cst_67 = arith.constant 1.000000e+00 : f32
    %189 = vector.broadcast %cst_67 : f32 to vector<2x128xf32>
    %190 = arith.addf %188, %189 : vector<2x128xf32>
    %cst_68 = arith.constant 5.000000e-01 : f32
    %191 = vector.broadcast %cst_68 : f32 to vector<2x128xf32>
    %192 = arith.mulf %191, %190 : vector<2x128xf32>
    %193 = arith.mulf %182, %157 : vector<2x128xf32>
    %194 = arith.mulf %174, %184 : vector<2x128xf32>
    %195 = arith.addf %193, %194 : vector<2x128xf32>
    %196 = math.tanh %195 : vector<2x128xf32>
    %197 = arith.mulf %192, %196 : vector<2x128xf32>
    %c4 = arith.constant 4 : index
    %c0_69 = arith.constant 0 : index
    %c0_70 = arith.constant 0 : index
    %198 = vector.load %arg5[%c4, %c0_69, %c0_70] : memref<8x2x128xf32, #tpu.memory_space<vmem>>, vector<1x2x128xf32>
    %199 = vector.shape_cast %198 : vector<1x2x128xf32> to vector<2x128xf32>
    %200 = vector.shape_cast %197 : vector<2x128xf32> to vector<1x2x128xf32>
    tpu.vector_store %arg5[%c4, %c0_69, %c0_70], %200 {strides = array<i32>} : memref<8x2x128xf32, #tpu.memory_space<vmem>>, vector<1x2x128xf32>,
    %201 = vector.extract_strided_slice %7 {offsets = [5, 0, 0], sizes = [1, 2, 512], strides = [1, 1, 1]} : vector<8x2x512xf32> to vector<1x2x512xf32>
    %202 = vector.shape_cast %201 : vector<1x2x512xf32> to vector<2x512xf32>
    %cst_71 = arith.constant dense<0.000000e+00> : vector<2x512xf32>
    %203 = tpu.matmul %197, %8, %cst_71 {dimension_numbers = #tpu.dot_dimension_numbers<[1], [0], [0], [1], [0, 0, 1, 1], [], []>} : vector<2x128xf32>, vector<128x512xf32>, vector<2x512xf32> -> vector<2x512xf32>
    %204 = arith.addf %202, %203 : vector<2x512xf32>
    %205 = vector.extract_strided_slice %204 {offsets = [0, 0], sizes = [2, 128], strides = [1, 1]} : vector<2x512xf32> to vector<2x128xf32>
    %cst_72 = arith.constant 5.000000e-01 : f32
    %206 = vector.broadcast %cst_72 : f32 to vector<2x128xf32>
    %207 = arith.mulf %206, %205 : vector<2x128xf32>
    %208 = math.tanh %207 : vector<2x128xf32>
    %cst_73 = arith.constant 1.000000e+00 : f32
    %209 = vector.broadcast %cst_73 : f32 to vector<2x128xf32>
    %210 = arith.addf %208, %209 : vector<2x128xf32>
    %cst_74 = arith.constant 5.000000e-01 : f32
    %211 = vector.broadcast %cst_74 : f32 to vector<2x128xf32>
    %212 = arith.mulf %211, %210 : vector<2x128xf32>
    %213 = vector.extract_strided_slice %204 {offsets = [0, 128], sizes = [2, 128], strides = [1, 1]} : vector<2x512xf32> to vector<2x128xf32>
    %cst_75 = arith.constant 5.000000e-01 : f32
    %214 = vector.broadcast %cst_75 : f32 to vector<2x128xf32>
    %215 = arith.mulf %214, %213 : vector<2x128xf32>
    %216 = math.tanh %215 : vector<2x128xf32>
    %cst_76 = arith.constant 1.000000e+00 : f32
    %217 = vector.broadcast %cst_76 : f32 to vector<2x128xf32>
    %218 = arith.addf %216, %217 : vector<2x128xf32>
    %cst_77 = arith.constant 5.000000e-01 : f32
    %219 = vector.broadcast %cst_77 : f32 to vector<2x128xf32>
    %220 = arith.mulf %219, %218 : vector<2x128xf32>
    %221 = vector.extract_strided_slice %204 {offsets = [0, 256], sizes = [2, 128], strides = [1, 1]} : vector<2x512xf32> to vector<2x128xf32>
    %222 = math.tanh %221 : vector<2x128xf32>
    %223 = vector.extract_strided_slice %204 {offsets = [0, 384], sizes = [2, 128], strides = [1, 1]} : vector<2x512xf32> to vector<2x128xf32>
    %cst_78 = arith.constant 5.000000e-01 : f32
    %224 = vector.broadcast %cst_78 : f32 to vector<2x128xf32>
    %225 = arith.mulf %224, %223 : vector<2x128xf32>
    %226 = math.tanh %225 : vector<2x128xf32>
    %cst_79 = arith.constant 1.000000e+00 : f32
    %227 = vector.broadcast %cst_79 : f32 to vector<2x128xf32>
    %228 = arith.addf %226, %227 : vector<2x128xf32>
    %cst_80 = arith.constant 5.000000e-01 : f32
    %229 = vector.broadcast %cst_80 : f32 to vector<2x128xf32>
    %230 = arith.mulf %229, %228 : vector<2x128xf32>
    %231 = arith.mulf %220, %195 : vector<2x128xf32>
    %232 = arith.mulf %212, %222 : vector<2x128xf32>
    %233 = arith.addf %231, %232 : vector<2x128xf32>
    %234 = math.tanh %233 : vector<2x128xf32>
    %235 = arith.mulf %230, %234 : vector<2x128xf32>
    %c5 = arith.constant 5 : index
    %c0_81 = arith.constant 0 : index
    %c0_82 = arith.constant 0 : index
    %236 = vector.load %arg5[%c5, %c0_81, %c0_82] : memref<8x2x128xf32, #tpu.memory_space<vmem>>, vector<1x2x128xf32>
    %237 = vector.shape_cast %236 : vector<1x2x128xf32> to vector<2x128xf32>
    %238 = vector.shape_cast %235 : vector<2x128xf32> to vector<1x2x128xf32>
    tpu.vector_store %arg5[%c5, %c0_81, %c0_82], %238 {strides = array<i32>} : memref<8x2x128xf32, #tpu.memory_space<vmem>>, vector<1x2x128xf32>,
    %239 = vector.extract_strided_slice %7 {offsets = [6, 0, 0], sizes = [1, 2, 512], strides = [1, 1, 1]} : vector<8x2x512xf32> to vector<1x2x512xf32>
    %240 = vector.shape_cast %239 : vector<1x2x512xf32> to vector<2x512xf32>
    %cst_83 = arith.constant dense<0.000000e+00> : vector<2x512xf32>
    %241 = tpu.matmul %235, %8, %cst_83 {dimension_numbers = #tpu.dot_dimension_numbers<[1], [0], [0], [1], [0, 0, 1, 1], [], []>} : vector<2x128xf32>, vector<128x512xf32>, vector<2x512xf32> -> vector<2x512xf32>
    %242 = arith.addf %240, %241 : vector<2x512xf32>
    %243 = vector.extract_strided_slice %242 {offsets = [0, 0], sizes = [2, 128], strides = [1, 1]} : vector<2x512xf32> to vector<2x128xf32>
    %cst_84 = arith.constant 5.000000e-01 : f32
    %244 = vector.broadcast %cst_84 : f32 to vector<2x128xf32>
    %245 = arith.mulf %244, %243 : vector<2x128xf32>
    %246 = math.tanh %245 : vector<2x128xf32>
    %cst_85 = arith.constant 1.000000e+00 : f32
    %247 = vector.broadcast %cst_85 : f32 to vector<2x128xf32>
    %248 = arith.addf %246, %247 : vector<2x128xf32>
    %cst_86 = arith.constant 5.000000e-01 : f32
    %249 = vector.broadcast %cst_86 : f32 to vector<2x128xf32>
    %250 = arith.mulf %249, %248 : vector<2x128xf32>
    %251 = vector.extract_strided_slice %242 {offsets = [0, 128], sizes = [2, 128], strides = [1, 1]} : vector<2x512xf32> to vector<2x128xf32>
    %cst_87 = arith.constant 5.000000e-01 : f32
    %252 = vector.broadcast %cst_87 : f32 to vector<2x128xf32>
    %253 = arith.mulf %252, %251 : vector<2x128xf32>
    %254 = math.tanh %253 : vector<2x128xf32>
    %cst_88 = arith.constant 1.000000e+00 : f32
    %255 = vector.broadcast %cst_88 : f32 to vector<2x128xf32>
    %256 = arith.addf %254, %255 : vector<2x128xf32>
    %cst_89 = arith.constant 5.000000e-01 : f32
    %257 = vector.broadcast %cst_89 : f32 to vector<2x128xf32>
    %258 = arith.mulf %257, %256 : vector<2x128xf32>
    %259 = vector.extract_strided_slice %242 {offsets = [0, 256], sizes = [2, 128], strides = [1, 1]} : vector<2x512xf32> to vector<2x128xf32>
    %260 = math.tanh %259 : vector<2x128xf32>
    %261 = vector.extract_strided_slice %242 {offsets = [0, 384], sizes = [2, 128], strides = [1, 1]} : vector<2x512xf32> to vector<2x128xf32>
    %cst_90 = arith.constant 5.000000e-01 : f32
    %262 = vector.broadcast %cst_90 : f32 to vector<2x128xf32>
    %263 = arith.mulf %262, %261 : vector<2x128xf32>
    %264 = math.tanh %263 : vector<2x128xf32>
    %cst_91 = arith.constant 1.000000e+00 : f32
    %265 = vector.broadcast %cst_91 : f32 to vector<2x128xf32>
    %266 = arith.addf %264, %265 : vector<2x128xf32>
    %cst_92 = arith.constant 5.000000e-01 : f32
    %267 = vector.broadcast %cst_92 : f32 to vector<2x128xf32>
    %268 = arith.mulf %267, %266 : vector<2x128xf32>
    %269 = arith.mulf %258, %233 : vector<2x128xf32>
    %270 = arith.mulf %250, %260 : vector<2x128xf32>
    %271 = arith.addf %269, %270 : vector<2x128xf32>
    %272 = math.tanh %271 : vector<2x128xf32>
    %273 = arith.mulf %268, %272 : vector<2x128xf32>
    %c6 = arith.constant 6 : index
    %c0_93 = arith.constant 0 : index
    %c0_94 = arith.constant 0 : index
    %274 = vector.load %arg5[%c6, %c0_93, %c0_94] : memref<8x2x128xf32, #tpu.memory_space<vmem>>, vector<1x2x128xf32>
    %275 = vector.shape_cast %274 : vector<1x2x128xf32> to vector<2x128xf32>
    %276 = vector.shape_cast %273 : vector<2x128xf32> to vector<1x2x128xf32>
    tpu.vector_store %arg5[%c6, %c0_93, %c0_94], %276 {strides = array<i32>} : memref<8x2x128xf32, #tpu.memory_space<vmem>>, vector<1x2x128xf32>,
    %277 = vector.extract_strided_slice %7 {offsets = [7, 0, 0], sizes = [1, 2, 512], strides = [1, 1, 1]} : vector<8x2x512xf32> to vector<1x2x512xf32>
    %278 = vector.shape_cast %277 : vector<1x2x512xf32> to vector<2x512xf32>
    %cst_95 = arith.constant dense<0.000000e+00> : vector<2x512xf32>
    %279 = tpu.matmul %273, %8, %cst_95 {dimension_numbers = #tpu.dot_dimension_numbers<[1], [0], [0], [1], [0, 0, 1, 1], [], []>} : vector<2x128xf32>, vector<128x512xf32>, vector<2x512xf32> -> vector<2x512xf32>
    %280 = arith.addf %278, %279 : vector<2x512xf32>
    %281 = vector.extract_strided_slice %280 {offsets = [0, 0], sizes = [2, 128], strides = [1, 1]} : vector<2x512xf32> to vector<2x128xf32>
    %cst_96 = arith.constant 5.000000e-01 : f32
    %282 = vector.broadcast %cst_96 : f32 to vector<2x128xf32>
    %283 = arith.mulf %282, %281 : vector<2x128xf32>
    %284 = math.tanh %283 : vector<2x128xf32>
    %cst_97 = arith.constant 1.000000e+00 : f32
    %285 = vector.broadcast %cst_97 : f32 to vector<2x128xf32>
    %286 = arith.addf %284, %285 : vector<2x128xf32>
    %cst_98 = arith.constant 5.000000e-01 : f32
    %287 = vector.broadcast %cst_98 : f32 to vector<2x128xf32>
    %288 = arith.mulf %287, %286 : vector<2x128xf32>
    %289 = vector.extract_strided_slice %280 {offsets = [0, 128], sizes = [2, 128], strides = [1, 1]} : vector<2x512xf32> to vector<2x128xf32>
    %cst_99 = arith.constant 5.000000e-01 : f32
    %290 = vector.broadcast %cst_99 : f32 to vector<2x128xf32>
    %291 = arith.mulf %290, %289 : vector<2x128xf32>
    %292 = math.tanh %291 : vector<2x128xf32>
    %cst_100 = arith.constant 1.000000e+00 : f32
    %293 = vector.broadcast %cst_100 : f32 to vector<2x128xf32>
    %294 = arith.addf %292, %293 : vector<2x128xf32>
    %cst_101 = arith.constant 5.000000e-01 : f32
    %295 = vector.broadcast %cst_101 : f32 to vector<2x128xf32>
    %296 = arith.mulf %295, %294 : vector<2x128xf32>
    %297 = vector.extract_strided_slice %280 {offsets = [0, 256], sizes = [2, 128], strides = [1, 1]} : vector<2x512xf32> to vector<2x128xf32>
    %298 = math.tanh %297 : vector<2x128xf32>
    %299 = vector.extract_strided_slice %280 {offsets = [0, 384], sizes = [2, 128], strides = [1, 1]} : vector<2x512xf32> to vector<2x128xf32>
    %cst_102 = arith.constant 5.000000e-01 : f32
    %300 = vector.broadcast %cst_102 : f32 to vector<2x128xf32>
    %301 = arith.mulf %300, %299 : vector<2x128xf32>
    %302 = math.tanh %301 : vector<2x128xf32>
    %cst_103 = arith.constant 1.000000e+00 : f32
    %303 = vector.broadcast %cst_103 : f32 to vector<2x128xf32>
    %304 = arith.addf %302, %303 : vector<2x128xf32>
    %cst_104 = arith.constant 5.000000e-01 : f32
    %305 = vector.broadcast %cst_104 : f32 to vector<2x128xf32>
    %306 = arith.mulf %305, %304 : vector<2x128xf32>
    %307 = arith.mulf %296, %271 : vector<2x128xf32>
    %308 = arith.mulf %288, %298 : vector<2x128xf32>
    %309 = arith.addf %307, %308 : vector<2x128xf32>
    %310 = math.tanh %309 : vector<2x128xf32>
    %311 = arith.mulf %306, %310 : vector<2x128xf32>
    %c7 = arith.constant 7 : index
    %c0_105 = arith.constant 0 : index
    %c0_106 = arith.constant 0 : index
    %312 = vector.load %arg5[%c7, %c0_105, %c0_106] : memref<8x2x128xf32, #tpu.memory_space<vmem>>, vector<1x2x128xf32>
    %313 = vector.shape_cast %312 : vector<1x2x128xf32> to vector<2x128xf32>
    %314 = vector.shape_cast %311 : vector<2x128xf32> to vector<1x2x128xf32>
    tpu.vector_store %arg5[%c7, %c0_105, %c0_106], %314 {strides = array<i32>} : memref<8x2x128xf32, #tpu.memory_space<vmem>>, vector<1x2x128xf32>,
    return
  }
  func.func @transform_0(%arg0: i32) -> (i32, i32, i32) {
    %c0_i32 = arith.constant 0 : i32
    %c0_i32_0 = arith.constant 0 : i32
    %c0_i32_1 = arith.constant 0 : i32
    return %c0_i32, %arg0, %c0_i32_0 : i32, i32, i32
  }
  func.func @transform_1(%arg0: i32) -> (i32, i32) {
    %c0_i32 = arith.constant 0 : i32
    %c0_i32_0 = arith.constant 0 : i32
    %c0_i32_1 = arith.constant 0 : i32
    return %c0_i32, %c0_i32_0 : i32, i32
  }
  func.func @transform_2(%arg0: i32) -> (i32, i32) {
    %c0_i32 = arith.constant 0 : i32
    %c0_i32_0 = arith.constant 0 : i32
    %c0_i32_1 = arith.constant 0 : i32
    return %c0_i32, %c0_i32_0 : i32, i32
  }
  func.func @transform_3(%arg0: i32) -> (i32, i32) {
    %c0_i32 = arith.constant 0 : i32
    %c0_i32_0 = arith.constant 0 : i32
    %c0_i32_1 = arith.constant 0 : i32
    return %c0_i32, %c0_i32_0 : i32, i32
  }
  func.func @transform_4(%arg0: i32) -> (i32, i32, i32) {
    %c0_i32 = arith.constant 0 : i32
    %c0_i32_0 = arith.constant 0 : i32
    %c0_i32_1 = arith.constant 0 : i32
    return %c0_i32, %arg0, %c0_i32_0 : i32, i32, i32
  }
}

</mosaic_0001>

<bundles_post_ra>
// kernel: tpu_custom_call.1
= control target key start
LH: loop header
LB: loop body
LE: loop exit
PB: predicated region body
PF: predicated region fallthrough
CT: control target
= control target key end

     0   :  { %9 = vsyncpa [#allocation3], 0  ;;  %s2569_s0 = inlined_call_operand.hbm [shape: f32[8,2,128], index: 0, kind: input, shape index: {}]   ;;  %s2570_s1 = inlined_call_operand.hbm [shape: f32[128,512], index: 1, kind: input, shape index: {}]   ;;  %s2571_s2 = inlined_call_operand.hbm [shape: f32[1,512], index: 2, kind: input, shape index: {}]   ;;  %s2572_s3 = inlined_call_operand.hbm [shape: f32[128,512], index: 3, kind: input, shape index: {}]   ;;  %s2573_s4 = inlined_call_operand.hbm [shape: f32[8,2,128], index: 4, kind: output, shape index: {}]  }
   0x1   :  { %10 = vsyncpa [#allocation6], 0 }
   0x2   :  { %11 = vsyncpa [#allocation9], 0  ;;  %s30_s17 = sshll.u32 %s2570_s1, 4  ;;  %s31_s17 = int_to_ptr.hbm [resolvable:$true] %s30_s17 }
   0x3   :  { %12 = vsyncpa [#allocation4], 0  ;;  %s1655_s18 = smov [#allocation5]   ;;  %s17_s22 = sshll.u32 %s2569_s0, 4  ;;  %s18_s22 = int_to_ptr.hbm [resolvable:$true] %s17_s22 }
   0x4   :  { %s32_s19 = sshll.u32 %s1655_s18, 4  ;;  %s1656_s23 = smov 512   ;;  %s33_s19 = int_to_ptr.vmem [resolvable:$true] %s32_s19 }
   0x5   :  { %s1657_s24 = smov 32   ;;  %s1658_s25 = smov [#allocation2]  }
   0x6   :  { %38 = dma.hbm_to_vmem [thread:$0]  %s31_s17, 8192, %s33_s19, [#allocation6], %s1656_s23, %s1656_s23, %s1657_s24  }
   0x7   :  { %s19_s26 = sshll.u32 %s1658_s25, 4  ;;  %s44_s1 = sshll.u32 %s2571_s2, 4  ;;  %s20_s26 = int_to_ptr.vmem [resolvable:$true] %s19_s26  ;;  %s45_s1 = int_to_ptr.hbm [resolvable:$true] %s44_s1 }
   0x8   :  { %s1659_s29 = smov 2   ;;  %s1660_s30 = smov [#allocation7]  }
   0x9   :  { %25 = dma.hbm_to_vmem [thread:$0]  %s18_s22, 256, %s20_s26, [#allocation3], %s1657_s24, %s1657_s24, %s1659_s29  }
   0xa   :  { %s46_s0 = sshll.u32 %s1660_s30, 4  ;;  %s54_s7 = sshll.u32 %s2572_s3, 4  ;;  %s47_s0 = int_to_ptr.vmem [resolvable:$true] %s46_s0  ;;  %s55_s7 = int_to_ptr.hbm [resolvable:$true] %s54_s7 }
   0xb   :  { %49 = dma.hbm_to_vmem [thread:$0]  %s45_s1, 64, %s47_s0, [#allocation6]  }
   0xc   :  { %s1661_s8 = smov [#allocation8]  }
   0xd   :  { %s56_s9 = sshll.u32 %s1661_s8, 4  ;;  %s57_s9 = int_to_ptr.vmem [resolvable:$true] %s56_s9 }
   0xe   :  { %62 = dma.hbm_to_vmem [thread:$0]  %s55_s7, 8192, %s57_s9, [#allocation9], %s1656_s23, %s1656_s23, %s1657_s24  }
   0xf   :  { %1647 = dma.done.wait [#allocation3], 256  }
  0x10   :  { %1648 = vsyncadd [#allocation3], 4294967040 }
  0x11   :  { %1649 = dma.done.wait [#allocation6], 8256  }
  0x12   :  { %1650 = vsyncadd [#allocation6], 4294959040 }
  0x13   :  { %1651 = dma.done.wait [#allocation9], 8192  }
  0x14   :  { %1652 = vsyncadd [#allocation9], 4294959104  ;;  %v149_v0 = vld [vmem:[#allocation5 + $0x1f0] sm:$0xff]  ;;  %v150_v1 = vld [vmem:[#allocation5 + $0x1f8] sm:$0xff]  ;;  %vm294_vm0 = vcmask 1041408   ;;  %vm300_vm1 = vcmask 1043458  }
  0x15   :  { %v145_v2 = vld [vmem:[#allocation5 + $0x1d0] sm:$0xff]  ;;  %234 = vmatpush.msra.mxu2 %v149_v0  ;;  %257 = vmatpush.msra.mxu3 %v150_v1  ;;  %v146_v3 = vld [vmem:[#allocation5 + $0x1d8] sm:$0xff]  ;;  %v148_v6 = vld [vmem:[#allocation5 + $0x1e8] sm:$0xff]  ;;  %vm302_vm2 = vcmask 1045504   ;;  %vm296_vm3 = vcmask 1045508   ;;  %vm298_vm4 = vcmask 1043456  }
  0x16   :  { %v141_v4 = vld [vmem:[#allocation5 + $0x1b0] sm:$0xff]  ;;  %v142_v5 = vld [vmem:[#allocation5 + $0x1b8] sm:$0xff]  ;;  %v147_v7 = vld [vmem:[#allocation5 + $0x1e0] sm:$0xff]  ;;  %211 = vmatpush.msra.mxu1 %v148_v6  ;;  %vm304_vm5 = vcmask 1045506   ;;  %s1663_s2 = smov [#allocation10]   ;;  %s1359_s12 = sshll.u32 %s2573_s4, 4  ;;  %s1360_s12 = int_to_ptr.hbm [resolvable:$true] %s1359_s12 }
  0x17   :  { %235 = vmatpush.msra.mxu2 %v145_v2  ;;  %258 = vmatpush.msra.mxu3 %v146_v3  ;;  %v144_v8 = vld [vmem:[#allocation5 + $0x1c8] sm:$0xff]  ;;  %v137_v9 = vld [vmem:[#allocation5 + $0x190] sm:$0xff]  ;;  %v138_v10 = vld [vmem:[#allocation5 + $0x198] sm:$0xff]  ;;  %s1357_s3 = sshll.u32 %s1663_s2, 4  ;;  %s1358_s3 = int_to_ptr.vmem [resolvable:$true] %s1357_s3 }
  0x18   :  { %188 = vmatpush.msra.mxu0 %v147_v7  ;;  %v143_v11 = vld [vmem:[#allocation5 + $0x1c0] sm:$0xff]  ;;  %v140_v12 = vld [vmem:[#allocation5 + $0x1a8] sm:$0xff]  ;;  %212 = vmatpush.msra.mxu1 %v144_v8  ;;  %v133_v14 = vld [vmem:[#allocation5 + $0x170] sm:$0xff] }
  0x19   :  { %236 = vmatpush.msra.mxu2 %v141_v4  ;;  %259 = vmatpush.msra.mxu3 %v142_v5  ;;  %v139_v13 = vld [vmem:[#allocation5 + $0x1a0] sm:$0xff]  ;;  %v134_v15 = vld [vmem:[#allocation5 + $0x178] sm:$0xff]  ;;  %v136_v16 = vld [vmem:[#allocation5 + $0x188] sm:$0xff] }
  0x1a   :  { %189 = vmatpush.msra.mxu0 %v143_v11  ;;  %v135_v17 = vld [vmem:[#allocation5 + $0x180] sm:$0xff]  ;;  %213 = vmatpush.msra.mxu1 %v140_v12  ;;  %v129_v18 = vld [vmem:[#allocation5 + $0x150] sm:$0xff]  ;;  %v130_v19 = vld [vmem:[#allocation5 + $0x158] sm:$0xff] }
  0x1b   :  { %237 = vmatpush.msra.mxu2 %v137_v9  ;;  %260 = vmatpush.msra.mxu3 %v138_v10  ;;  %v132_v20 = vld [vmem:[#allocation5 + $0x168] sm:$0xff]  ;;  %v131_v21 = vld [vmem:[#allocation5 + $0x160] sm:$0xff]  ;;  %v125_v22 = vld [vmem:[#allocation5 + $0x130] sm:$0xff] }
  0x1c   :  { %190 = vmatpush.msra.mxu0 %v139_v13  ;;  %214 = vmatpush.msra.mxu1 %v136_v16  ;;  %v126_v23 = vld [vmem:[#allocation5 + $0x138] sm:$0xff]  ;;  %v128_v24 = vld [vmem:[#allocation5 + $0x148] sm:$0xff]  ;;  %v127_v25 = vld [vmem:[#allocation5 + $0x140] sm:$0xff] }
  0x1d   :  { %238 = vmatpush.msra.mxu2 %v133_v14  ;;  %261 = vmatpush.msra.mxu3 %v134_v15  ;;  %v121_v26 = vld [vmem:[#allocation5 + $0x110] sm:$0xff]  ;;  %v122_v27 = vld [vmem:[#allocation5 + $0x118] sm:$0xff]  ;;  %v124_v28 = vld [vmem:[#allocation5 + $0x128] sm:$0xff] }
  0x1e   :  { %191 = vmatpush.msra.mxu0 %v135_v17  ;;  %215 = vmatpush.msra.mxu1 %v132_v20  ;;  %v123_v29 = vld [vmem:[#allocation5 + $0x120] sm:$0xff]  ;;  %v117_v30 = vld [vmem:[#allocation5 + $0xf0] sm:$0xff]  ;;  %v118_v31 = vld [vmem:[#allocation5 + $0xf8] sm:$0xff] }
  0x1f   :  { %239 = vmatpush.msra.mxu2 %v129_v18  ;;  %262 = vmatpush.msra.mxu3 %v130_v19  ;;  %v120_v32 = vld [vmem:[#allocation5 + $0x108] sm:$0xff]  ;;  %v119_v33 = vld [vmem:[#allocation5 + $0x100] sm:$0xff]  ;;  %v113_v34 = vld [vmem:[#allocation5 + $0xd0] sm:$0xff] }
  0x20   :  { %192 = vmatpush.msra.mxu0 %v131_v21  ;;  %216 = vmatpush.msra.mxu1 %v128_v24  ;;  %v114_v35 = vld [vmem:[#allocation5 + $0xd8] sm:$0xff]  ;;  %v116_v36 = vld [vmem:[#allocation5 + $0xe8] sm:$0xff]  ;;  %v115_v37 = vld [vmem:[#allocation5 + $0xe0] sm:$0xff] }
  0x21   :  { %240 = vmatpush.msra.mxu2 %v125_v22  ;;  %263 = vmatpush.msra.mxu3 %v126_v23  ;;  %v109_v38 = vld [vmem:[#allocation5 + $0xb0] sm:$0xff]  ;;  %v110_v39 = vld [vmem:[#allocation5 + $0xb8] sm:$0xff]  ;;  %v112_v40 = vld [vmem:[#allocation5 + $0xc8] sm:$0xff] }
  0x22   :  { %193 = vmatpush.msra.mxu0 %v127_v25  ;;  %217 = vmatpush.msra.mxu1 %v124_v28  ;;  %v111_v41 = vld [vmem:[#allocation5 + $0xc0] sm:$0xff]  ;;  %v105_v42 = vld [vmem:[#allocation5 + $0x90] sm:$0xff]  ;;  %v106_v43 = vld [vmem:[#allocation5 + $0x98] sm:$0xff] }
  0x23   :  { %241 = vmatpush.msra.mxu2 %v121_v26  ;;  %264 = vmatpush.msra.mxu3 %v122_v27  ;;  %v108_v44 = vld [vmem:[#allocation5 + $0xa8] sm:$0xff]  ;;  %v107_v45 = vld [vmem:[#allocation5 + $0xa0] sm:$0xff]  ;;  %v101_v46 = vld [vmem:[#allocation5 + $0x70] sm:$0xff] }
  0x24   :  { %194 = vmatpush.msra.mxu0 %v123_v29  ;;  %218 = vmatpush.msra.mxu1 %v120_v32  ;;  %v102_v47 = vld [vmem:[#allocation5 + $0x78] sm:$0xff]  ;;  %v104_v48 = vld [vmem:[#allocation5 + $0x88] sm:$0xff]  ;;  %v103_v49 = vld [vmem:[#allocation5 + $0x80] sm:$0xff] }
  0x25   :  { %242 = vmatpush.msra.mxu2 %v117_v30  ;;  %265 = vmatpush.msra.mxu3 %v118_v31  ;;  %v97_v50 = vld [vmem:[#allocation5 + $0x50] sm:$0xff]  ;;  %v98_v51 = vld [vmem:[#allocation5 + $0x58] sm:$0xff]  ;;  %v100_v52 = vld [vmem:[#allocation5 + $0x68] sm:$0xff] }
  0x26   :  { %195 = vmatpush.msra.mxu0 %v119_v33  ;;  %219 = vmatpush.msra.mxu1 %v116_v36  ;;  %v99_v53 = vld [vmem:[#allocation5 + $0x60] sm:$0xff]  ;;  %v93_v54 = vld [vmem:[#allocation5 + $0x30] sm:$0xff]  ;;  %v94_v55 = vld [vmem:[#allocation5 + $0x38] sm:$0xff] }
  0x27   :  { %243 = vmatpush.msra.mxu2 %v113_v34  ;;  %266 = vmatpush.msra.mxu3 %v114_v35  ;;  %v96_v56 = vld [vmem:[#allocation5 + $0x48] sm:$0xff]  ;;  %v95_v57 = vld [vmem:[#allocation5 + $0x40] sm:$0xff]  ;;  %v89_v58 = vld [vmem:[#allocation5 + $0x10] sm:$0xff] }
  0x28   :  { %196 = vmatpush.msra.mxu0 %v115_v37  ;;  %220 = vmatpush.msra.mxu1 %v112_v40  ;;  %v90_v59 = vld [vmem:[#allocation5 + $0x18] sm:$0xff]  ;;  %v92_v62 = vld [vmem:[#allocation5 + $0x28] sm:$0xff]  ;;  %v79_v63 = vld [vmem:[#allocation2] sm:$0x3] }
  0x29   :  { %244 = vmatpush.msra.mxu2 %v109_v38  ;;  %267 = vmatpush.msra.mxu3 %v110_v39  ;;  %v1706_v60 = vld [vmem:[#allocation8 + $0x1f0] sm:$0xff]  ;;  %v1708_v61 = vld [vmem:[#allocation8 + $0x1f8] sm:$0xff]  ;;  %v80_v1 = vld [vmem:[#allocation2 + $0x2] sm:$0x3]  ;;  %169 = vst [vmem:[#allocation1] ss:$4 sm:$0xff] %v79_v63 }
  0x2a   :  { %197 = vmatpush.msra.mxu0 %v111_v41  ;;  %221 = vmatpush.msra.mxu1 %v108_v44  ;;  %v91_v0 = vld [vmem:[#allocation5 + $0x20] sm:$0xff]  ;;  %v81_v2 = vld [vmem:[#allocation2 + $0x4] sm:$0x3]  ;;  %v82_v5 = vld [vmem:[#allocation2 + $0x6] sm:$0x3] }
  0x2b   :  { %245 = vmatpush.msra.mxu2 %v105_v42  ;;  %268 = vmatpush.msra.mxu3 %v106_v43  ;;  %v1710_v3 = vld [vmem:[#allocation8 + $0x1d0] sm:$0xff]  ;;  %v1712_v4 = vld [vmem:[#allocation8 + $0x1d8] sm:$0xff]  ;;  %v88_v6 = vld [vmem:[#allocation5 + $0x8] sm:$0xff]  ;;  %171 = vst [vmem:[#allocation1 + $0x1] ss:$4 sm:$0xff] %v80_v1 }
  0x2c   :  { %198 = vmatpush.msra.mxu0 %v107_v45  ;;  %222 = vmatpush.msra.mxu1 %v104_v48  ;;  %v87_v7 = vld [vmem:[#allocation5] sm:$0xff]  ;;  %v1716_v8 = vld [vmem:[#allocation8 + $0x1b0] sm:$0xff]  ;;  %v1720_v10 = vld [vmem:[#allocation8 + $0x1e8] sm:$0xff]  ;;  %173 = vst [vmem:[#allocation1 + $0x2] ss:$4 sm:$0xff] %v81_v2 }
  0x2d   :  { %246 = vmatpush.msra.mxu2 %v101_v46  ;;  %269 = vmatpush.msra.mxu3 %v102_v47  ;;  %v1718_v9 = vld [vmem:[#allocation8 + $0x1b8] sm:$0xff]  ;;  %v1724_v11 = vld [vmem:[#allocation8 + $0x190] sm:$0xff]  ;;  %v1728_v13 = vld [vmem:[#allocation8 + $0x1e0] sm:$0xff]  ;;  %175 = vst [vmem:[#allocation1 + $0x3] ss:$4 sm:$0xff] %v82_v5 }
  0x2e   :  { %199 = vmatpush.msra.mxu0 %v103_v49  ;;  %223 = vmatpush.msra.mxu1 %v100_v52  ;;  %v1726_v12 = vld [vmem:[#allocation8 + $0x198] sm:$0xff]  ;;  %v1730_v14 = vld [vmem:[#allocation8 + $0x1c8] sm:$0xff]  ;;  %v1732_v15 = vld [vmem:[#allocation8 + $0x170] sm:$0xff] }
  0x2f   :  { %247 = vmatpush.msra.mxu2 %v97_v50  ;;  %270 = vmatpush.msra.mxu3 %v98_v51  ;;  %v1734_v16 = vld [vmem:[#allocation8 + $0x178] sm:$0xff]  ;;  %v1738_v17 = vld [vmem:[#allocation8 + $0x1c0] sm:$0xff]  ;;  %v83_v18 = vld [vmem:[#allocation2 + $0x8] sm:$0x3] }
  0x30   :  { %200 = vmatpush.msra.mxu0 %v99_v53  ;;  %224 = vmatpush.msra.mxu1 %v96_v56  ;;  %v84_v19 = vld [vmem:[#allocation2 + $0xa] sm:$0x3]  ;;  %v85_v20 = vld [vmem:[#allocation2 + $0xc] sm:$0x3]  ;;  %v86_v21 = vld [vmem:[#allocation2 + $0xe] sm:$0x3] }
  0x31   :  { %248 = vmatpush.msra.mxu2 %v93_v54  ;;  %271 = vmatpush.msra.mxu3 %v94_v55  ;;  %177 = vst [vmem:[#allocation1 + $0x20] ss:$4 sm:$0xff] %v83_v18  ;;  %v1744_v22 = vld [vmem:[#allocation8 + $0x1a8] sm:$0xff]  ;;  %v1746_v23 = vld [vmem:[#allocation8 + $0x1a0] sm:$0xff]  ;;  %v1750_v24 = vld [vmem:[#allocation8 + $0x150] sm:$0xff] }
  0x32   :  { %201 = vmatpush.msra.mxu0 %v95_v57  ;;  %225 = vmatpush.msra.mxu1 %v92_v62  ;;  %179 = vst [vmem:[#allocation1 + $0x21] ss:$4 sm:$0xff] %v84_v19  ;;  %v1752_v25 = vld [vmem:[#allocation8 + $0x158] sm:$0xff]  ;;  %v1756_v26 = vld [vmem:[#allocation8 + $0x188] sm:$0xff]  ;;  %v1758_v27 = vld [vmem:[#allocation8 + $0x180] sm:$0xff]  ;;  %v1662_v19 = vmov 0.0  }
  0x33   :  { %249 = vmatpush.msra.mxu2 %v89_v58  ;;  %272 = vmatpush.msra.mxu3 %v90_v59  ;;  %181 = vst [vmem:[#allocation1 + $0x22] ss:$4 sm:$0xff] %v85_v20  ;;  %v1762_v28 = vld [vmem:[#allocation8 + $0x130] sm:$0xff]  ;;  %v1764_v29 = vld [vmem:[#allocation8 + $0x138] sm:$0xff]  ;;  %v1768_v30 = vld [vmem:[#allocation8 + $0x168] sm:$0xff] }
  0x34   :  { %202 = vmatpush.msra.mxu0 %v91_v0  ;;  %226 = vmatpush.msra.mxu1 %v88_v6  ;;  %183 = vst [vmem:[#allocation1 + $0x23] ss:$4 sm:$0xff] %v86_v21  ;;  %v184_v31 = vld.sshfl [vmem:[#allocation1] sm:$0xff pattern:$0x73625140]  ;;  %v1772_v32 = vld [vmem:[#allocation8 + $0x110] sm:$0xff] }
  0x35   :  { %442 = vmatpush.msrb.mxu2 %v1706_v60  ;;  %462 = vmatpush.msrb.mxu3 %v1708_v61  ;;  %v1774_v33 = vld [vmem:[#allocation8 + $0x118] sm:$0xff]  ;;  %v1778_v34 = vld [vmem:[#allocation8 + $0x160] sm:$0xff]  ;;  %v1781_v35 = vld [vmem:[#allocation8 + $0x148] sm:$0xff] }
  0x36   :  { %203 = vmatpush.msra.mxu0 %v87_v7  ;;  %422 = vmatpush.msrb.mxu1 %v1720_v10  ;;  %v1783_v36 = vld [vmem:[#allocation8 + $0xf0] sm:$0xff]  ;;  %v1787_v37 = vld [vmem:[#allocation8 + $0xf8] sm:$0xff]  ;;  %v1789_v38 = vld [vmem:[#allocation8 + $0x140] sm:$0xff] }
  0x37   :  { %443 = vmatpush.msrb.mxu2 %v1710_v3  ;;  %463 = vmatpush.msrb.mxu3 %v1712_v4  ;;  %v1792_v39 = vld [vmem:[#allocation8 + $0x128] sm:$0xff]  ;;  %v1794_v40 = vld [vmem:[#allocation8 + $0xd0] sm:$0xff]  ;;  %v1798_v41 = vld [vmem:[#allocation8 + $0xd8] sm:$0xff] }
  0x38   :  { %402 = vmatpush.msrb.mxu0 %v1728_v13  ;;  %423 = vmatpush.msrb.mxu1 %v1730_v14  ;;  %2665 = vst [vmem:[#allocation15_spill] sm:$0xff] %v1794_v40  ;;  %v1800_v42 = vld [vmem:[#allocation8 + $0x120] sm:$0xff]  ;;  %v1804_v43 = vld [vmem:[#allocation8 + $0x108] sm:$0xff]  ;;  %v1806_v44 = vld [vmem:[#allocation8 + $0xb0] sm:$0xff] }
  0x39   :  { %444 = vmatpush.msrb.mxu2 %v1716_v8  ;;  %464 = vmatpush.msrb.mxu3 %v1718_v9  ;;  %2666 = vst [vmem:[#allocation16_spill] sm:$0xff] %v1798_v41  ;;  %v1810_v45 = vld [vmem:[#allocation8 + $0xb8] sm:$0xff]  ;;  %v1814_v46 = vld [vmem:[#allocation8 + $0x100] sm:$0xff]  ;;  %v1816_v47 = vld [vmem:[#allocation8 + $0xe8] sm:$0xff] }
  0x3a   :  { %403 = vmatpush.msrb.mxu0 %v1738_v17  ;;  %424 = vmatpush.msrb.mxu1 %v1744_v22  ;;  %2667 = vst [vmem:[#allocation17_spill] sm:$0xff] %v1806_v44  ;;  %v1820_v48 = vld [vmem:[#allocation8 + $0x90] sm:$0xff]  ;;  %v1822_v49 = vld [vmem:[#allocation8 + $0x98] sm:$0xff]  ;;  %v1827_v51 = vld [vmem:[#allocation8 + $0xe0] sm:$0xff] }
  0x3b   :  { %445 = vmatpush.msrb.mxu2 %v1724_v11  ;;  %465 = vmatpush.msrb.mxu3 %v1726_v12  ;;  %2668 = vst [vmem:[#allocation18_spill] sm:$0xff] %v1810_v45  ;;  %v185_v50 = vld.sshfl [vmem:[#allocation1 + $0x20] sm:$0xff pattern:$0x73625140]  ;;  %v1833_v53 = vld [vmem:[#allocation8 + $0x70] sm:$0xff]  ;;  %v1835_v54 = vld [vmem:[#allocation8 + $0x78] sm:$0xff] }
  0x3c   :  { %404 = vmatpush.msrb.mxu0 %v1746_v23  ;;  %425 = vmatpush.msrb.mxu1 %v1756_v26  ;;  %2669 = vst [vmem:[#allocation19_spill] sm:$0xff] %v1820_v48  ;;  %v1831_v52 = vld [vmem:[#allocation8 + $0xc8] sm:$0xff]  ;;  %v1837_v55 = vld [vmem:[#allocation8 + $0xc0] sm:$0xff]  ;;  %v1842_v57 = vld [vmem:[#allocation8 + $0x50] sm:$0xff] }
  0x3d   :  { %446 = vmatpush.msrb.mxu2 %v1732_v15  ;;  %466 = vmatpush.msrb.mxu3 %v1734_v16  ;;  %2670 = vst [vmem:[#allocation20_spill] sm:$0xff] %v1822_v49  ;;  %v1840_v56 = vld [vmem:[#allocation8 + $0xa8] sm:$0xff]  ;;  %v1846_v58 = vld [vmem:[#allocation8 + $0x58] sm:$0xff]  ;;  %v1848_v59 = vld [vmem:[#allocation8 + $0xa0] sm:$0xff] }
  0x3e   :  { %405 = vmatpush.msrb.mxu0 %v1758_v27  ;;  %426 = vmatpush.msrb.mxu1 %v1768_v30  ;;  %2671 = vst [vmem:[#allocation21_spill] sm:$0xff] %v1831_v52  ;;  %v1852_v62 = vld [vmem:[#allocation8 + $0x88] sm:$0xff]  ;;  %v1854_v63 = vld [vmem:[#allocation8 + $0x30] sm:$0xff]  ;;  %v1858_v0 = vld [vmem:[#allocation8 + $0x38] sm:$0xff] }
  0x3f   :  { %447 = vmatpush.msrb.mxu2 %v1750_v24  ;;  %467 = vmatpush.msrb.mxu3 %v1752_v25  ;;  %2672 = vst [vmem:[#allocation22_spill] sm:$0xff] %v1833_v53  ;;  %v1862_v1 = vld [vmem:[#allocation8 + $0x80] sm:$0xff]  ;;  %v1864_v2 = vld [vmem:[#allocation8 + $0x68] sm:$0xff]  ;;  %v1868_v5 = vld [vmem:[#allocation8 + $0x10] sm:$0xff] }
  0x40   :  { %250 = vmatmul.f32.vlgmr.msra.gmra.mxu2 %v184_v31  ;;  %273 = vmatmul.f32.vlgmr.msra.gmra.mxu3 %v184_v31  ;;  %2673 = vst [vmem:[#allocation23_spill] sm:$0xff] %v1835_v54  ;;  %v1870_v6 = vld [vmem:[#allocation8 + $0x18] sm:$0xff]  ;;  %v1875_v7 = vld [vmem:[#allocation8 + $0x60] sm:$0xff]  ;;  %v1879_v18 = vld [vmem:[#allocation8 + $0x48] sm:$0xff] }
  0x41   :  { %448 = vmatpush.msrb.mxu2 %v1762_v28  ;;  %468 = vmatpush.msrb.mxu3 %v1764_v29  ;;  %2674 = vst [vmem:[#allocation24_spill] sm:$0xff] %v1837_v55  ;;  %v1881_v20 = vld [vmem:[#allocation8 + $0x40] sm:$0xff]  ;;  %v1884_v21 = vld [vmem:[#allocation8 + $0x28] sm:$0xff] }
  0x42   :  { %406 = vmatpush.msrb.mxu0 %v1778_v34  ;;  %427 = vmatpush.msrb.mxu1 %v1781_v35  ;;  %2675 = vst [vmem:[#allocation25_spill] sm:$0xff] %v1840_v56 }
  0x43   :  { %449 = vmatpush.msrb.mxu2 %v1772_v32  ;;  %469 = vmatpush.msrb.mxu3 %v1774_v33  ;;  %2676 = vst [vmem:[#allocation26_spill] sm:$0xff] %v1842_v57 }
  0x44   :  { %407 = vmatpush.msrb.mxu0 %v1789_v38  ;;  %428 = vmatpush.msrb.mxu1 %v1792_v39  ;;  %2677 = vst [vmem:[#allocation27_spill] sm:$0xff] %v1846_v58 }
  0x45   :  { %450 = vmatpush.msrb.mxu2 %v1783_v36  ;;  %470 = vmatpush.msrb.mxu3 %v1787_v37  ;;  %2678 = vst [vmem:[#allocation28_spill] sm:$0xff] %v1848_v59 }
  0x46   :  { %408 = vmatpush.msrb.mxu0 %v1800_v42  ;;  %429 = vmatpush.msrb.mxu1 %v1804_v43  ;;  %2679 = vst [vmem:[#allocation29_spill] sm:$0xff] %v1852_v62 }
  0x47   :  { %451 = vmatpush.msrb.mxu2 %v1794_v40  ;;  %471 = vmatpush.msrb.mxu3 %v1798_v41  ;;  %2680 = vst [vmem:[#allocation30_spill] sm:$0xff] %v1854_v63 }
  0x48   :  { %227 = vmatmul.f32.vlgmr.msra.gmra.mxu1 %v184_v31  ;;  %409 = vmatpush.msrb.mxu0 %v1814_v46  ;;  %2681 = vst [vmem:[#allocation31_spill] sm:$0xff] %v1858_v0 }
  0x49   :  { %452 = vmatpush.msrb.mxu2 %v1806_v44  ;;  %472 = vmatpush.msrb.mxu3 %v1810_v45  ;;  %2682 = vst [vmem:[#allocation32_spill] sm:$0xff] %v1862_v1 }
  0x4a   :  { %430 = vmatpush.msrb.mxu1 %v1816_v47  ;;  %204 = vmatmul.f32.vlgmr.msra.gmra.mxu0 %v184_v31  ;;  %2683 = vst [vmem:[#allocation33_spill] sm:$0xff] %v1864_v2  ;;  %v1887_v31 = vld [vmem:[#allocation8 + $0x20] sm:$0xff] }
  0x4b   :  { %453 = vmatpush.msrb.mxu2 %v1820_v48  ;;  %473 = vmatpush.msrb.mxu3 %v1822_v49  ;;  %2684 = vst [vmem:[#allocation34_spill] sm:$0xff] %v1868_v5 }
  0x4c   :  { %253 = vmatmul.f32.gmra.mxu2 %v185_v50  ;;  %276 = vmatmul.f32.gmra.mxu3 %v185_v50  ;;  %2685 = vst [vmem:[#allocation35_spill] sm:$0xff] %v1870_v6 }
  0x4d   :  { %410 = vmatpush.msrb.mxu0 %v1827_v51  ;;  %431 = vmatpush.msrb.mxu1 %v1831_v52  ;;  %2686 = vst [vmem:[#allocation36_spill] sm:$0xff] %v1875_v7 }
  0x4e   :  { %454 = vmatpush.msrb.mxu2 %v1833_v53  ;;  %474 = vmatpush.msrb.mxu3 %v1835_v54  ;;  %2687 = vst [vmem:[#allocation37_spill] sm:$0xff] %v1879_v18 }
  0x4f   :  { %411 = vmatpush.msrb.mxu0 %v1837_v55  ;;  %432 = vmatpush.msrb.mxu1 %v1840_v56  ;;  %2688 = vst [vmem:[#allocation38_spill] sm:$0xff] %v1881_v20 }
  0x50   :  { %455 = vmatpush.msrb.mxu2 %v1842_v57  ;;  %475 = vmatpush.msrb.mxu3 %v1846_v58  ;;  %2689 = vst [vmem:[#allocation39_spill] sm:$0xff] %v1884_v21 }
  0x51   :  { %412 = vmatpush.msrb.mxu0 %v1848_v59  ;;  %433 = vmatpush.msrb.mxu1 %v1852_v62  ;;  %2690 = vst [vmem:[#allocation40_spill] sm:$0xff] %v1887_v31 }
  0x52   :  { %456 = vmatpush.msrb.mxu2 %v1854_v63  ;;  %476 = vmatpush.msrb.mxu3 %v1858_v0 }
  0x53   :  { %230 = vmatmul.f32.gmra.mxu1 %v185_v50  ;;  %413 = vmatpush.msrb.mxu0 %v1862_v1 }
  0x54   :  { %434 = vmatpush.msrb.mxu1 %v1864_v2  ;;  %457 = vmatpush.msrb.mxu2 %v1868_v5 }
  0x55   :  { %477 = vmatpush.msrb.mxu3 %v1870_v6  ;;  %207 = vmatmul.f32.gmra.mxu0 %v185_v50  ;;  %v1891_v6 = vld [vmem:[#allocation8 + $0x8] sm:$0xff]  ;;  %v1895_v50 = vld [vmem:[#allocation8] sm:$0xff] }
  0x56   :  { %458 = vmatmul.f32.vlgmr.msrb.gmra.mxu2 %v1662_v19  ;;  %478 = vmatmul.f32.vlgmr.msrb.gmra.mxu3 %v1662_v19  ;;  %2691 = vst [vmem:[#allocation41_spill] sm:$0xff] %v1891_v6 }
  0x57   :  { %414 = vmatpush.msrb.mxu0 %v1875_v7  ;;  %435 = vmatpush.msrb.mxu1 %v1879_v18  ;;  %2692 = vst [vmem:[#allocation42_spill] sm:$0xff] %v1895_v50 }
  0x58   :  { %560 = vmatpush.msra.mxu2 %v1706_v60  ;;  %580 = vmatpush.msra.mxu3 %v1708_v61 }
  0x59   :  { %415 = vmatpush.msrb.mxu0 %v1881_v20  ;;  %436 = vmatpush.msrb.mxu1 %v1884_v21 }
  0x5a   :  { %561 = vmatpush.msra.mxu2 %v1710_v3  ;;  %581 = vmatpush.msra.mxu3 %v1712_v4 }
  0x5b   :  { %416 = vmatpush.msrb.mxu0 %v1887_v31  ;;  %437 = vmatpush.msrb.mxu1 %v1891_v6 }
  0x5c   :  { %562 = vmatpush.msra.mxu2 %v1716_v8  ;;  %438 = vmatmul.f32.vlgmr.msrb.gmra.mxu1 %v1662_v19 }
  0x5d   :  { %417 = vmatpush.msrb.mxu0 %v1895_v50  ;;  %540 = vmatpush.msra.mxu1 %v1720_v10 }
  0x5e   :  { %418 = vmatmul.f32.vlgmr.msrb.gmra.mxu0 %v1662_v19  ;;  %582 = vmatpush.msra.mxu3 %v1718_v9  ;;  %v2693_v19 = vld [vmem:[#allocation35_spill] sm:$0xff] }
  0x5f   :  { %520 = vmatpush.msra.mxu0 %v1728_v13  ;;  %541 = vmatpush.msra.mxu1 %v1730_v14 }
  0x60   :  { %563 = vmatpush.msra.mxu2 %v1724_v11  ;;  %583 = vmatpush.msra.mxu3 %v1726_v12 }
  0x61   :  { %521 = vmatpush.msra.mxu0 %v1738_v17  ;;  %542 = vmatpush.msra.mxu1 %v1744_v22 }
  0x62   :  { %564 = vmatpush.msra.mxu2 %v1732_v15  ;;  %584 = vmatpush.msra.mxu3 %v1734_v16 }
  0x63   :  { %522 = vmatpush.msra.mxu0 %v1746_v23  ;;  %543 = vmatpush.msra.mxu1 %v1756_v26 }
  0x64   :  { %565 = vmatpush.msra.mxu2 %v1750_v24  ;;  %585 = vmatpush.msra.mxu3 %v1752_v25 }
  0x65   :  { %523 = vmatpush.msra.mxu0 %v1758_v27  ;;  %544 = vmatpush.msra.mxu1 %v1768_v30 }
  0x66   :  { %566 = vmatpush.msra.mxu2 %v1762_v28  ;;  %586 = vmatpush.msra.mxu3 %v1764_v29 }
  0x67   :  { %524 = vmatpush.msra.mxu0 %v1778_v34  ;;  %545 = vmatpush.msra.mxu1 %v1781_v35 }
  0x68   :  { %567 = vmatpush.msra.mxu2 %v1772_v32  ;;  %587 = vmatpush.msra.mxu3 %v1774_v33 }
  0x69   :  { %525 = vmatpush.msra.mxu0 %v1789_v38  ;;  %546 = vmatpush.msra.mxu1 %v1792_v39 }
  0x6a   :  { %568 = vmatpush.msra.mxu2 %v1783_v36  ;;  %588 = vmatpush.msra.mxu3 %v1787_v37 }
  0x6b   :  { %526 = vmatpush.msra.mxu0 %v1800_v42  ;;  %547 = vmatpush.msra.mxu1 %v1804_v43 }
  0x6c   :  { %569 = vmatpush.msra.mxu2 %v1794_v40  ;;  %589 = vmatpush.msra.mxu3 %v1798_v41 }
  0x6d   :  { %527 = vmatpush.msra.mxu0 %v1814_v46  ;;  %548 = vmatpush.msra.mxu1 %v1816_v47 }
  0x6e   :  { %570 = vmatpush.msra.mxu2 %v1806_v44  ;;  %590 = vmatpush.msra.mxu3 %v1810_v45 }
  0x6f   :  { %528 = vmatpush.msra.mxu0 %v1827_v51  ;;  %549 = vmatpush.msra.mxu1 %v1831_v52 }
  0x70   :  { %571 = vmatpush.msra.mxu2 %v1820_v48  ;;  %591 = vmatpush.msra.mxu3 %v1822_v49 }
  0x71   :  { %529 = vmatpush.msra.mxu0 %v1837_v55  ;;  %550 = vmatpush.msra.mxu1 %v1840_v56 }
  0x72   :  { %572 = vmatpush.msra.mxu2 %v1833_v53  ;;  %592 = vmatpush.msra.mxu3 %v1835_v54 }
  0x73   :  { %530 = vmatpush.msra.mxu0 %v1848_v59  ;;  %551 = vmatpush.msra.mxu1 %v1852_v62 }
  0x74   :  { %573 = vmatpush.msra.mxu2 %v1842_v57  ;;  %593 = vmatpush.msra.mxu3 %v1846_v58 }
  0x75   :  { %531 = vmatpush.msra.mxu0 %v1862_v1  ;;  %552 = vmatpush.msra.mxu1 %v1864_v2 }
  0x76   :  { %574 = vmatpush.msra.mxu2 %v1854_v63  ;;  %594 = vmatpush.msra.mxu3 %v1858_v0 }
  0x77   :  { %532 = vmatpush.msra.mxu0 %v1875_v7  ;;  %553 = vmatpush.msra.mxu1 %v1879_v18 }
  0x78   :  { %575 = vmatpush.msra.mxu2 %v1868_v5  ;;  %595 = vmatpush.msra.mxu3 %v2693_v19 }
  0x79   :  { %533 = vmatpush.msra.mxu0 %v1881_v20  ;;  %554 = vmatpush.msra.mxu1 %v1884_v21 }
  0x7a   :  { %679 = vmatpush.msrb.mxu2 %v1706_v60  ;;  %699 = vmatpush.msrb.mxu3 %v1708_v61 }
  0x7b   :  { %534 = vmatpush.msra.mxu0 %v1887_v31  ;;  %555 = vmatpush.msra.mxu1 %v1891_v6 }
  0x7c   :  { %680 = vmatpush.msrb.mxu2 %v1710_v3  ;;  %700 = vmatpush.msrb.mxu3 %v1712_v4 }
  0x7d   :  { %535 = vmatpush.msra.mxu0 %v1895_v50  ;;  %659 = vmatpush.msrb.mxu1 %v1720_v10 }
  0x7e   :  { %681 = vmatpush.msrb.mxu2 %v1716_v8  ;;  %701 = vmatpush.msrb.mxu3 %v1718_v9 }
  0x7f   :  { %639 = vmatpush.msrb.mxu0 %v1728_v13  ;;  %660 = vmatpush.msrb.mxu1 %v1730_v14 }
  0x80   :  { %682 = vmatpush.msrb.mxu2 %v1724_v11  ;;  %702 = vmatpush.msrb.mxu3 %v1726_v12 }
  0x81   :  { %640 = vmatpush.msrb.mxu0 %v1738_v17  ;;  %661 = vmatpush.msrb.mxu1 %v1744_v22 }
  0x82   :  { %683 = vmatpush.msrb.mxu2 %v1732_v15  ;;  %703 = vmatpush.msrb.mxu3 %v1734_v16 }
  0x83   :  { %641 = vmatpush.msrb.mxu0 %v1746_v23  ;;  %662 = vmatpush.msrb.mxu1 %v1756_v26 }
  0x84   :  { %684 = vmatpush.msrb.mxu2 %v1750_v24  ;;  %704 = vmatpush.msrb.mxu3 %v1752_v25 }
  0x85   :  { %642 = vmatpush.msrb.mxu0 %v1758_v27  ;;  %663 = vmatpush.msrb.mxu1 %v1768_v30 }
  0x86   :  { %685 = vmatpush.msrb.mxu2 %v1762_v28  ;;  %705 = vmatpush.msrb.mxu3 %v1764_v29 }
  0x87   :  { %643 = vmatpush.msrb.mxu0 %v1778_v34  ;;  %664 = vmatpush.msrb.mxu1 %v1781_v35 }
  0x88   :  { %686 = vmatpush.msrb.mxu2 %v1772_v32  ;;  %706 = vmatpush.msrb.mxu3 %v1774_v33 }
  0x89   :  { %644 = vmatpush.msrb.mxu0 %v1789_v38  ;;  %665 = vmatpush.msrb.mxu1 %v1792_v39 }
  0x8a   :  { %687 = vmatpush.msrb.mxu2 %v1783_v36  ;;  %707 = vmatpush.msrb.mxu3 %v1787_v37 }
  0x8b   :  { %645 = vmatpush.msrb.mxu0 %v1800_v42  ;;  %666 = vmatpush.msrb.mxu1 %v1804_v43 }
  0x8c   :  { %688 = vmatpush.msrb.mxu2 %v1794_v40  ;;  %708 = vmatpush.msrb.mxu3 %v1798_v41 }
  0x8d   :  { %646 = vmatpush.msrb.mxu0 %v1814_v46  ;;  %667 = vmatpush.msrb.mxu1 %v1816_v47 }
  0x8e   :  { %689 = vmatpush.msrb.mxu2 %v1806_v44  ;;  %709 = vmatpush.msrb.mxu3 %v1810_v45 }
  0x8f   :  { %647 = vmatpush.msrb.mxu0 %v1827_v51  ;;  %668 = vmatpush.msrb.mxu1 %v1831_v52 }
  0x90   :  { %690 = vmatpush.msrb.mxu2 %v1820_v48  ;;  %710 = vmatpush.msrb.mxu3 %v1822_v49 }
  0x91   :  { %648 = vmatpush.msrb.mxu0 %v1837_v55  ;;  %669 = vmatpush.msrb.mxu1 %v1840_v56 }
  0x92   :  { %691 = vmatpush.msrb.mxu2 %v1833_v53  ;;  %711 = vmatpush.msrb.mxu3 %v1835_v54 }
  0x93   :  { %649 = vmatpush.msrb.mxu0 %v1848_v59  ;;  %670 = vmatpush.msrb.mxu1 %v1852_v62 }
  0x94   :  { %692 = vmatpush.msrb.mxu2 %v1842_v57  ;;  %712 = vmatpush.msrb.mxu3 %v1846_v58  ;;  %v151_v58 = vld [vmem:[#allocation7] sm:$0xf] }
  0x95   :  { %650 = vmatpush.msrb.mxu0 %v1862_v1  ;;  %671 = vmatpush.msrb.mxu1 %v1864_v2  ;;  %v155_v57 = vperm.slane %v151_v58, 2  ;;  %v153_v2 = vperm.slane %v151_v58, 0 }
  0x96   :  { %693 = vmatpush.msrb.mxu2 %v1854_v63  ;;  %713 = vmatpush.msrb.mxu3 %v1858_v0  ;;  %v156_v63 = vperm.slane %v151_v58, 3 }
  0x97   :  { %651 = vmatpush.msrb.mxu0 %v1875_v7  ;;  %672 = vmatpush.msrb.mxu1 %v1879_v18  ;;  %v154_v18 = vperm.slane %v151_v58, 1 }
  0x98   :  { %694 = vmatpush.msrb.mxu2 %v1868_v5  ;;  %714 = vmatpush.msrb.mxu3 %v2693_v19 }
  0x99   :  { %652 = vmatpush.msrb.mxu0 %v1881_v20  ;;  %673 = vmatpush.msrb.mxu1 %v1884_v21 }
  0x9b   :  { %653 = vmatpush.msrb.mxu0 %v1887_v31  ;;  %674 = vmatpush.msrb.mxu1 %v1891_v6 }
  0x9d   :  { %654 = vmatpush.msrb.mxu0 %v1895_v50 }
  0xc3   :  { %v251_v54 = vpop.f32.mrf.mxu2  ;;  %v274_v0 = vpop.f32.mrf.mxu3 }
  0xc4   :  { %v252_v20 = vadd.f32 %v251_v54, %v155_v57  ;;  %v275_v5 = vadd.f32 %v274_v0, %v156_v63 }
  0xc5   :  { %v228_v53 = vpop.f32.mrf.mxu1 }
  0xc6   :  { %v229_v21 = vadd.f32 %v228_v53, %v154_v18  ;;  %v289_v7 = vrot.slane %v252_v20, 4  ;;  %v290_v31 = vrot.slane %v275_v5, 2 }
  0xc7   :  { %v205_v6 = vpop.f32.mrf.mxu0 }
  0xc8   :  { %v288_v19 = vrot.slane %v229_v21, 6  ;;  %v206_v50 = vadd.f32 %v205_v6, %v153_v2  ;;  %v303_v49 = vsel %vm302_vm2, %v290_v31, %v289_v7  ;;  %v308_v54 = vsel %vm294_vm0, %v289_v7, %v290_v31 }
  0xc9   :  { %v312_v48 = vsel %vm300_vm1, %v289_v7, %v290_v31 }
  0xca   :  { %v301_v53 = vsel %vm300_vm1, %v206_v50, %v288_v19  ;;  %v307_v58 = vsel %vm296_vm3, %v206_v50, %v288_v19  ;;  %v311_v0 = vsel %vm302_vm2, %v288_v19, %v206_v50 }
  0xcb   :  { %v2033_v20 = vsel %vm304_vm5, %v301_v53, %v303_v49  ;;  %v2036_v5 = vsel %vm298_vm4, %v308_v54, %v307_v58  ;;  %v2039_v6 = vsel %vm304_vm5, %v312_v48, %v311_v0 }
  0xcc   :  { %2694 = vst [vmem:[#allocation43_spill] sm:$0xff] %v2036_v5  ;;  %v2725_v5 = vld [vmem:[#allocation41_spill] sm:$0xff] }
  0xcd   :  { %2695 = vst [vmem:[#allocation44_spill] sm:$0xff] %v2039_v6  ;;  %v2724_v6 = vld [vmem:[#allocation42_spill] sm:$0xff] }
  0xcf   :  { %v254_v21 = vpop.f32.mrf.mxu2  ;;  %v277_v45 = vpop.f32.mrf.mxu3 }
  0xd0   :  { %v231_v62 = vpop.f32.mrf.mxu1  ;;  %v255_v1 = vadd.f32 %v254_v21, %v155_v57  ;;  %v278_v56 = vadd.f32 %v277_v45, %v156_v63 }
  0xd1   :  { %v232_v44 = vadd.f32 %v231_v62, %v154_v18 }
  0xd2   :  { %v292_v59 = vrot.slane %v255_v1, 4  ;;  %v293_v40 = vrot.slane %v278_v56, 2  ;;  %v208_v52 = vpop.f32.mrf.mxu0 }
  0xd3   :  { %v291_v41 = vrot.slane %v232_v44, 6  ;;  %v209_v55 = vadd.f32 %v208_v52, %v153_v2 }
  0xd4   :  { %v316_v49 = vsel %vm296_vm3, %v292_v59, %v293_v40  ;;  %v319_v53 = vsel %vm302_vm2, %v293_v40, %v292_v59  ;;  %v323_v54 = vsel %vm294_vm0, %v292_v59, %v293_v40  ;;  %v327_v48 = vsel %vm300_vm1, %v292_v59, %v293_v40 }
  0xd5   :  { %v315_v58 = vsel %vm294_vm0, %v209_v55, %v291_v41  ;;  %v318_v57 = vsel %vm300_vm1, %v209_v55, %v291_v41  ;;  %v322_v62 = vsel %vm296_vm3, %v209_v55, %v291_v41  ;;  %v326_v45 = vsel %vm302_vm2, %v291_v41, %v209_v55 }
  0xd6   :  { %v2050_v44 = vsel %vm298_vm4, %v315_v58, %v316_v49  ;;  %v2053_v52 = vsel %vm304_vm5, %v318_v57, %v319_v53  ;;  %v2056_v56 = vsel %vm298_vm4, %v323_v54, %v322_v62  ;;  %v2059_v63 = vsel %vm304_vm5, %v327_v48, %v326_v45 }
  0xd7   :  { %2696 = vst [vmem:[#allocation45_spill] sm:$0xff] %v2050_v44  ;;  %v295_v41 = vsel %vm294_vm0, %v206_v50, %v288_v19  ;;  %v297_v55 = vsel %vm296_vm3, %v289_v7, %v290_v31  ;;  %v2723_v44 = vld [vmem:[#allocation31_spill] sm:$0xff] }
  0xd8   :  { %2697 = vst [vmem:[#allocation46_spill] sm:$0xff] %v2053_v52  ;;  %v299_v54 = vsel %vm298_vm4, %v295_v41, %v297_v55  ;;  %v2722_v52 = vld [vmem:[#allocation30_spill] sm:$0xff] }
  0xd9   :  { %2698 = vst [vmem:[#allocation47_spill] sm:$0xff] %v2056_v56  ;;  %v459_v40 = vpop.f32.mrf.mxu2  ;;  %v439_v59 = vpop.f32.mrf.mxu1  ;;  %v2721_v56 = vld [vmem:[#allocation39_spill] sm:$0xff] }
  0xda   :  { %2699 = vst [vmem:[#allocation48_spill] sm:$0xff] %v2059_v63  ;;  %v487_v1 = vrot.slane %v459_v40, 4  ;;  %v479_v2 = vpop.f32.mrf.mxu3  ;;  %v486_v18 = vrot.slane %v439_v59, 6  ;;  %v2720_v63 = vld [vmem:[#allocation40_spill] sm:$0xff] }
  0xdb   :  { %v488_v0 = vrot.slane %v479_v2, 2  ;;  %v419_v21 = vpop.f32.mrf.mxu0 }
  0xdc   :  { %v489_v53 = vsel %vm294_vm0, %v419_v21, %v486_v18 }
  0xdd   :  { %v490_v49 = vsel %vm296_vm3, %v487_v1, %v488_v0 }
  0xde   :  { %v491_v48 = vsel %vm298_vm4, %v489_v53, %v490_v49 }
  0xdf   :  { %v493_v58 = vadd.f32 %v491_v48, %v299_v54 }
  0xe1   :  { %v494_v57 = vmul.f32 0.5, %v493_v58  ;;  %v499_v62 = vrot.slane %v493_v58, 2  ;;  %v508_v40 = vrot.slane %v493_v58, 6  ;;  %v505_v59 = vrot.slane %v493_v58, 4 }
  0xe3   :  { %1383 = vtanh.f32 %v494_v57  ;;  %v501_v45 = vmul.f32 0.5, %v499_v62  ;;  %v510_v50 = vmul.f32 0.5, %v508_v40  ;;  %v2700_v57 = vld [vmem:[#allocation24_spill] sm:$0xff]  ;;  %v2701_v62 = vld [vmem:[#allocation21_spill] sm:$0xff] }
  0xe4   :  { %v2703_v40 = vld [vmem:[#allocation16_spill] sm:$0xff] }
  0xe5   :  { %1385 = vtanh.f32 %v501_v45  ;;  %v2702_v45 = vld [vmem:[#allocation15_spill] sm:$0xff] }
  0xe6   :  { %1387 = vtanh.f32 %v505_v59  ;;  %v2704_v59 = vld [vmem:[#allocation28_spill] sm:$0xff] }
  0xe7   :  { %1389 = vtanh.f32 %v510_v50  ;;  %v2705_v50 = vld [vmem:[#allocation25_spill] sm:$0xff] }
  0xe9   :  { %v1384_v19 = vpop.eup %1383 }
  0xea   :  { %v496_v7 = vadd.f32 1.0, %v1384_v19  ;;  %v2706_v19 = vld [vmem:[#allocation17_spill] sm:$0xff] }
  0xeb   :  { %v1386_v31 = vpop.eup %1385 }
  0xec   :  { %v497_v1 = vmul.f32 0.5, %v496_v7  ;;  %v503_v2 = vadd.f32 1.0, %v1386_v31  ;;  %v1388_v0 = vpop.eup %1387  ;;  %v2707_v7 = vld [vmem:[#allocation18_spill] sm:$0xff]  ;;  %v2708_v31 = vld [vmem:[#allocation32_spill] sm:$0xff] }
  0xed   :  { %v1390_v21 = vpop.eup %1389 }
  0xee   :  { %v504_v18 = vmul.f32 0.5, %v503_v2  ;;  %v515_v55 = vmul.f32 %v1388_v0, %v497_v1  ;;  %v512_v53 = vadd.f32 1.0, %v1390_v21  ;;  %v2709_v1 = vld [vmem:[#allocation29_spill] sm:$0xff]  ;;  %v2710_v2 = vld [vmem:[#allocation19_spill] sm:$0xff]  ;;  %v2712_v0 = vld [vmem:[#allocation36_spill] sm:$0xff] }
  0xef   :  { %v2715_v21 = vld [vmem:[#allocation23_spill] sm:$0xff] }
  0xf0   :  { %v514_v41 = vmul.f32 0.0, %v504_v18  ;;  %v513_v54 = vmul.f32 0.5, %v512_v53  ;;  %v2711_v18 = vld [vmem:[#allocation20_spill] sm:$0xff]  ;;  %v2716_v53 = vld [vmem:[#allocation38_spill] sm:$0xff] }
  0xf2   :  { %v2067_v49 = vadd.f32 %v515_v55, %v514_v41  ;;  %v2713_v41 = vld [vmem:[#allocation33_spill] sm:$0xff]  ;;  %v2714_v55 = vld [vmem:[#allocation22_spill] sm:$0xff] }
  0xf4   :  { %1391 = vtanh.f32 %v2067_v49 }
  0xfa   :  { %v1392_v48 = vpop.eup %1391 }
  0xfb   :  { %v518_v58 = vmul.f32 %v1392_v48, %v513_v54  ;;  %v2717_v54 = vld [vmem:[#allocation37_spill] sm:$0xff]  ;;  %v2718_v48 = vld [vmem:[#allocation26_spill] sm:$0xff] }
  0xfd   :  { %519 = vst [vmem:[#allocation10] sm:$0x3] %v518_v58  ;;  %536 = vmatmul.f32.vlgmr.msra.gmra.mxu0 %v518_v58  ;;  %556 = vmatmul.f32.vlgmr.msra.gmra.mxu1 %v518_v58 }
  0xfe   :  { %576 = vmatmul.f32.vlgmr.msra.gmra.mxu2 %v518_v58  ;;  %596 = vmatmul.f32.vlgmr.msra.gmra.mxu3 %v518_v58  ;;  %v2719_v58 = vld [vmem:[#allocation27_spill] sm:$0xff] }
  0xff   :  { %758 = vmatpush.msra.mxu0 %v1728_v13  ;;  %778 = vmatpush.msra.mxu1 %v1720_v10 }
 0x100   :  { %798 = vmatpush.msra.mxu2 %v1706_v60  ;;  %818 = vmatpush.msra.mxu3 %v1708_v61 }
 0x101   :  { %759 = vmatpush.msra.mxu0 %v1738_v17  ;;  %779 = vmatpush.msra.mxu1 %v1730_v14 }
 0x102   :  { %799 = vmatpush.msra.mxu2 %v1710_v3  ;;  %819 = vmatpush.msra.mxu3 %v1712_v4 }
 0x103   :  { %760 = vmatpush.msra.mxu0 %v1746_v23  ;;  %780 = vmatpush.msra.mxu1 %v1744_v22 }
 0x104   :  { %800 = vmatpush.msra.mxu2 %v1716_v8  ;;  %820 = vmatpush.msra.mxu3 %v1718_v9 }
 0x105   :  { %761 = vmatpush.msra.mxu0 %v1758_v27  ;;  %781 = vmatpush.msra.mxu1 %v1756_v26 }
 0x106   :  { %801 = vmatpush.msra.mxu2 %v1724_v11  ;;  %821 = vmatpush.msra.mxu3 %v1726_v12 }
 0x107   :  { %762 = vmatpush.msra.mxu0 %v1778_v34  ;;  %782 = vmatpush.msra.mxu1 %v1768_v30 }
 0x108   :  { %802 = vmatpush.msra.mxu2 %v1732_v15  ;;  %822 = vmatpush.msra.mxu3 %v1734_v16 }
 0x109   :  { %763 = vmatpush.msra.mxu0 %v1789_v38  ;;  %783 = vmatpush.msra.mxu1 %v1781_v35 }
 0x10a   :  { %803 = vmatpush.msra.mxu2 %v1750_v24  ;;  %823 = vmatpush.msra.mxu3 %v1752_v25 }
 0x10b   :  { %764 = vmatpush.msra.mxu0 %v1800_v42  ;;  %784 = vmatpush.msra.mxu1 %v1792_v39 }
 0x10c   :  { %804 = vmatpush.msra.mxu2 %v1762_v28  ;;  %824 = vmatpush.msra.mxu3 %v1764_v29 }
 0x10d   :  { %765 = vmatpush.msra.mxu0 %v1814_v46  ;;  %785 = vmatpush.msra.mxu1 %v1804_v43 }
 0x10e   :  { %805 = vmatpush.msra.mxu2 %v1772_v32  ;;  %825 = vmatpush.msra.mxu3 %v1774_v33 }
 0x10f   :  { %766 = vmatpush.msra.mxu0 %v1827_v51  ;;  %786 = vmatpush.msra.mxu1 %v1816_v47 }
 0x110   :  { %806 = vmatpush.msra.mxu2 %v1783_v36  ;;  %826 = vmatpush.msra.mxu3 %v1787_v37 }
 0x111   :  { %767 = vmatpush.msra.mxu0 %v2700_v57  ;;  %787 = vmatpush.msra.mxu1 %v2701_v62 }
 0x112   :  { %807 = vmatpush.msra.mxu2 %v2702_v45  ;;  %827 = vmatpush.msra.mxu3 %v2703_v40 }
 0x113   :  { %768 = vmatpush.msra.mxu0 %v2704_v59  ;;  %788 = vmatpush.msra.mxu1 %v2705_v50 }
 0x114   :  { %808 = vmatpush.msra.mxu2 %v2706_v19  ;;  %828 = vmatpush.msra.mxu3 %v2707_v7 }
 0x115   :  { %769 = vmatpush.msra.mxu0 %v2708_v31  ;;  %789 = vmatpush.msra.mxu1 %v2709_v1 }
 0x116   :  { %809 = vmatpush.msra.mxu2 %v2710_v2  ;;  %829 = vmatpush.msra.mxu3 %v2711_v18 }
 0x117   :  { %770 = vmatpush.msra.mxu0 %v2712_v0  ;;  %790 = vmatpush.msra.mxu1 %v2713_v41 }
 0x118   :  { %810 = vmatpush.msra.mxu2 %v2714_v55  ;;  %830 = vmatpush.msra.mxu3 %v2715_v21  ;;  %v2726_v21 = vld [vmem:[#allocation34_spill] sm:$0xff] }
 0x119   :  { %771 = vmatpush.msra.mxu0 %v2716_v53  ;;  %791 = vmatpush.msra.mxu1 %v2717_v54  ;;  %v2727_v53 = vld [vmem:[#allocation35_spill] sm:$0xff] }
 0x11a   :  { %811 = vmatpush.msra.mxu2 %v2718_v48  ;;  %831 = vmatpush.msra.mxu3 %v2719_v58 }
 0x11b   :  { %772 = vmatpush.msra.mxu0 %v2720_v63  ;;  %792 = vmatpush.msra.mxu1 %v2721_v56 }
 0x11c   :  { %812 = vmatpush.msra.mxu2 %v2722_v52  ;;  %832 = vmatpush.msra.mxu3 %v2723_v44  ;;  %v306_v52 = vrot.slane %v2033_v20, 2 }
 0x11d   :  { %773 = vmatpush.msra.mxu0 %v2724_v6  ;;  %793 = vmatpush.msra.mxu1 %v2725_v5 }
 0x11e   :  { %813 = vmatpush.msra.mxu2 %v2726_v21  ;;  %833 = vmatpush.msra.mxu3 %v2727_v53 }
 0x17a   :  { %v557_v54 = vpop.f32.mrf.mxu1  ;;  %v537_v0 = vpop.f32.mrf.mxu0 }
 0x17b   :  { %v604_v48 = vrot.slane %v557_v54, 6 }
 0x17d   :  { %v607_v56 = vsel %vm294_vm0, %v537_v0, %v604_v48 }
 0x181   :  { %v577_v55 = vpop.f32.mrf.mxu2  ;;  %v597_v58 = vpop.f32.mrf.mxu3 }
 0x182   :  { %v605_v41 = vrot.slane %v577_v55, 4  ;;  %v606_v63 = vrot.slane %v597_v58, 2 }
 0x184   :  { %v608_v44 = vsel %vm296_vm3, %v605_v41, %v606_v63 }
 0x185   :  { %v609_v6 = vsel %vm298_vm4, %v607_v56, %v608_v44 }
 0x186   :  { %v611_v5 = vadd.f32 %v609_v6, %v306_v52 }
 0x188   :  { %v612_v18 = vmul.f32 0.5, %v611_v5  ;;  %v617_v21 = vrot.slane %v611_v5, 2  ;;  %v626_v2 = vrot.slane %v611_v5, 6  ;;  %v623_v54 = vrot.slane %v611_v5, 4 }
 0x18a   :  { %1393 = vtanh.f32 %v612_v18  ;;  %v619_v53 = vmul.f32 0.5, %v617_v21  ;;  %v628_v1 = vmul.f32 0.5, %v626_v2 }
 0x18c   :  { %1395 = vtanh.f32 %v619_v53 }
 0x18d   :  { %1397 = vtanh.f32 %v623_v54 }
 0x18e   :  { %1399 = vtanh.f32 %v628_v1 }
 0x190   :  { %v1394_v55 = vpop.eup %1393 }
 0x191   :  { %v614_v58 = vadd.f32 1.0, %v1394_v55 }
 0x192   :  { %v1396_v31 = vpop.eup %1395 }
 0x193   :  { %v615_v0 = vmul.f32 0.5, %v614_v58  ;;  %v621_v48 = vadd.f32 1.0, %v1396_v31  ;;  %v1398_v63 = vpop.eup %1397 }
 0x194   :  { %v1400_v52 = vpop.eup %1399 }
 0x195   :  { %v622_v20 = vmul.f32 0.5, %v621_v48  ;;  %v633_v6 = vmul.f32 %v1398_v63, %v615_v0  ;;  %v630_v18 = vadd.f32 1.0, %v1400_v52  ;;  %v2217_v63 = vld [vmem:[#allocation8 + $0x1e8] sm:$0xff]  ;;  %v2226_v52 = vld [vmem:[#allocation8 + $0x1c0] sm:$0xff] }
 0x197   :  { %v632_v44 = vmul.f32 %v622_v20, %v2067_v49  ;;  %v631_v5 = vmul.f32 0.5, %v630_v18  ;;  %v2214_v20 = vld [vmem:[#allocation8 + $0x1e0] sm:$0xff]  ;;  %v2232_v18 = vld [vmem:[#allocation8 + $0x1d0] sm:$0xff] }
 0x199   :  { %v2139_v56 = vadd.f32 %v633_v6, %v632_v44  ;;  %v2220_v44 = vld [vmem:[#allocation8 + $0x1f0] sm:$0xff]  ;;  %v2223_v6 = vld [vmem:[#allocation8 + $0x1f8] sm:$0xff] }
 0x19b   :  { %1401 = vtanh.f32 %v2139_v56 }
 0x1a1   :  { %v1402_v2 = vpop.eup %1401 }
 0x1a2   :  { %v636_v41 = vmul.f32 %v1402_v2, %v631_v5  ;;  %v2235_v5 = vld [vmem:[#allocation8 + $0x1d8] sm:$0xff]  ;;  %v2238_v2 = vld [vmem:[#allocation8 + $0x1a0] sm:$0xff] }
 0x1a4   :  { %638 = vst [vmem:[#allocation10 + $0x2] sm:$0x3] %v636_v41  ;;  %655 = vmatmul.f32.vlgmr.msrb.gmra.mxu0 %v636_v41  ;;  %675 = vmatmul.f32.vlgmr.msrb.gmra.mxu1 %v636_v41 }
 0x1a5   :  { %695 = vmatmul.f32.vlgmr.msrb.gmra.mxu2 %v636_v41  ;;  %715 = vmatmul.f32.vlgmr.msrb.gmra.mxu3 %v636_v41  ;;  %v2241_v41 = vld [vmem:[#allocation8 + $0x1a8] sm:$0xff] }
 0x1a6   :  { %877 = vmatpush.msrb.mxu0 %v1728_v13  ;;  %897 = vmatpush.msrb.mxu1 %v1720_v10  ;;  %v2734_v10 = vld [vmem:[#allocation22_spill] sm:$0xff]  ;;  %v2737_v13 = vld [vmem:[#allocation37_spill] sm:$0xff] }
 0x1a7   :  { %917 = vmatpush.msrb.mxu2 %v1706_v60  ;;  %937 = vmatpush.msrb.mxu3 %v1708_v61  ;;  %v2728_v60 = vld [vmem:[#allocation32_spill] sm:$0xff]  ;;  %v2729_v61 = vld [vmem:[#allocation29_spill] sm:$0xff] }
 0x1a8   :  { %878 = vmatpush.msrb.mxu0 %v1738_v17  ;;  %898 = vmatpush.msrb.mxu1 %v1730_v14  ;;  %v2738_v14 = vld [vmem:[#allocation26_spill] sm:$0xff]  ;;  %v2741_v17 = vld [vmem:[#allocation39_spill] sm:$0xff] }
 0x1a9   :  { %918 = vmatpush.msrb.mxu2 %v1710_v3  ;;  %938 = vmatpush.msrb.mxu3 %v1712_v4  ;;  %v2730_v3 = vld [vmem:[#allocation19_spill] sm:$0xff]  ;;  %v2731_v4 = vld [vmem:[#allocation20_spill] sm:$0xff] }
 0x1aa   :  { %879 = vmatpush.msrb.mxu0 %v1746_v23  ;;  %899 = vmatpush.msrb.mxu1 %v1744_v22  ;;  %v2742_v22 = vld [vmem:[#allocation30_spill] sm:$0xff]  ;;  %v2743_v23 = vld [vmem:[#allocation31_spill] sm:$0xff] }
 0x1ab   :  { %919 = vmatpush.msrb.mxu2 %v1716_v8  ;;  %939 = vmatpush.msrb.mxu3 %v1718_v9  ;;  %v2732_v8 = vld [vmem:[#allocation36_spill] sm:$0xff]  ;;  %v2733_v9 = vld [vmem:[#allocation33_spill] sm:$0xff] }
 0x1ac   :  { %880 = vmatpush.msrb.mxu0 %v1758_v27  ;;  %900 = vmatpush.msrb.mxu1 %v1756_v26  ;;  %v2746_v26 = vld [vmem:[#allocation34_spill] sm:$0xff]  ;;  %v2747_v27 = vld [vmem:[#allocation35_spill] sm:$0xff] }
 0x1ad   :  { %920 = vmatpush.msrb.mxu2 %v1724_v11  ;;  %940 = vmatpush.msrb.mxu3 %v1726_v12  ;;  %v2735_v11 = vld [vmem:[#allocation23_spill] sm:$0xff]  ;;  %v2736_v12 = vld [vmem:[#allocation38_spill] sm:$0xff] }
 0x1ae   :  { %881 = vmatpush.msrb.mxu0 %v1778_v34  ;;  %901 = vmatpush.msrb.mxu1 %v1768_v30 }
 0x1af   :  { %921 = vmatpush.msrb.mxu2 %v1732_v15  ;;  %941 = vmatpush.msrb.mxu3 %v1734_v16  ;;  %v2739_v15 = vld [vmem:[#allocation27_spill] sm:$0xff]  ;;  %v2740_v16 = vld [vmem:[#allocation40_spill] sm:$0xff] }
 0x1b0   :  { %882 = vmatpush.msrb.mxu0 %v1789_v38  ;;  %902 = vmatpush.msrb.mxu1 %v1781_v35 }
 0x1b1   :  { %922 = vmatpush.msrb.mxu2 %v1750_v24  ;;  %942 = vmatpush.msrb.mxu3 %v1752_v25  ;;  %v2744_v24 = vld [vmem:[#allocation42_spill] sm:$0xff]  ;;  %v2745_v25 = vld [vmem:[#allocation41_spill] sm:$0xff] }
 0x1b2   :  { %883 = vmatpush.msrb.mxu0 %v1800_v42  ;;  %903 = vmatpush.msrb.mxu1 %v1792_v39 }
 0x1b3   :  { %923 = vmatpush.msrb.mxu2 %v1762_v28  ;;  %943 = vmatpush.msrb.mxu3 %v1764_v29 }
 0x1b4   :  { %884 = vmatpush.msrb.mxu0 %v1814_v46  ;;  %904 = vmatpush.msrb.mxu1 %v1804_v43 }
 0x1b5   :  { %924 = vmatpush.msrb.mxu2 %v1772_v32  ;;  %944 = vmatpush.msrb.mxu3 %v1774_v33 }
 0x1b6   :  { %885 = vmatpush.msrb.mxu0 %v1827_v51  ;;  %905 = vmatpush.msrb.mxu1 %v1816_v47 }
 0x1b7   :  { %925 = vmatpush.msrb.mxu2 %v1783_v36  ;;  %945 = vmatpush.msrb.mxu3 %v1787_v37  ;;  %v2748_v37 = vld [vmem:[#allocation43_spill] sm:$0xff] }
 0x1b8   :  { %886 = vmatpush.msrb.mxu0 %v2700_v57  ;;  %906 = vmatpush.msrb.mxu1 %v2701_v62  ;;  %v310_v38 = vrot.slane %v2748_v37, 4  ;;  %v2310_v37 = vld [vmem:[#allocation8 + $0xe0] sm:$0xff] }
 0x1b9   :  { %926 = vmatpush.msrb.mxu2 %v2702_v45  ;;  %946 = vmatpush.msrb.mxu3 %v2703_v40 }
 0x1ba   :  { %887 = vmatpush.msrb.mxu0 %v2704_v59  ;;  %907 = vmatpush.msrb.mxu1 %v2705_v50 }
 0x1bb   :  { %927 = vmatpush.msrb.mxu2 %v2706_v19  ;;  %947 = vmatpush.msrb.mxu3 %v2707_v7 }
 0x1bc   :  { %888 = vmatpush.msrb.mxu0 %v2728_v60  ;;  %908 = vmatpush.msrb.mxu1 %v2729_v61  ;;  %v2244_v60 = vld [vmem:[#allocation8 + $0x1b0] sm:$0xff]  ;;  %v2247_v61 = vld [vmem:[#allocation8 + $0x1b8] sm:$0xff] }
 0x1bd   :  { %928 = vmatpush.msrb.mxu2 %v2730_v3  ;;  %948 = vmatpush.msrb.mxu3 %v2731_v4  ;;  %v2250_v3 = vld [vmem:[#allocation8 + $0x180] sm:$0xff]  ;;  %v2253_v4 = vld [vmem:[#allocation8 + $0x188] sm:$0xff] }
 0x1be   :  { %889 = vmatpush.msrb.mxu0 %v2732_v8  ;;  %909 = vmatpush.msrb.mxu1 %v2733_v9  ;;  %v2256_v9 = vld [vmem:[#allocation8 + $0x190] sm:$0xff] }
 0x1bf   :  { %929 = vmatpush.msrb.mxu2 %v2734_v10  ;;  %949 = vmatpush.msrb.mxu3 %v2735_v11  ;;  %v2259_v10 = vld [vmem:[#allocation8 + $0x198] sm:$0xff]  ;;  %v2262_v11 = vld [vmem:[#allocation8 + $0x160] sm:$0xff] }
 0x1c0   :  { %890 = vmatpush.msrb.mxu0 %v2736_v12  ;;  %910 = vmatpush.msrb.mxu1 %v2737_v13  ;;  %v2265_v13 = vld [vmem:[#allocation8 + $0x168] sm:$0xff] }
 0x1c1   :  { %930 = vmatpush.msrb.mxu2 %v2738_v14  ;;  %950 = vmatpush.msrb.mxu3 %v2739_v15  ;;  %v2268_v14 = vld [vmem:[#allocation8 + $0x170] sm:$0xff]  ;;  %v2271_v15 = vld [vmem:[#allocation8 + $0x178] sm:$0xff] }
 0x1c2   :  { %891 = vmatpush.msrb.mxu0 %v2740_v16  ;;  %911 = vmatpush.msrb.mxu1 %v2741_v17 }
 0x1c3   :  { %931 = vmatpush.msrb.mxu2 %v2742_v22  ;;  %951 = vmatpush.msrb.mxu3 %v2743_v23  ;;  %v2274_v22 = vld [vmem:[#allocation8 + $0x140] sm:$0xff]  ;;  %v2277_v23 = vld [vmem:[#allocation8 + $0x148] sm:$0xff] }
 0x1c4   :  { %892 = vmatpush.msrb.mxu0 %v2744_v24  ;;  %912 = vmatpush.msrb.mxu1 %v2745_v25 }
 0x1c5   :  { %932 = vmatpush.msrb.mxu2 %v2746_v26  ;;  %952 = vmatpush.msrb.mxu3 %v2747_v27  ;;  %v2280_v26 = vld [vmem:[#allocation8 + $0x150] sm:$0xff]  ;;  %v2283_v27 = vld [vmem:[#allocation8 + $0x158] sm:$0xff] }
 0x221   :  { %v676_v28 = vpop.f32.mrf.mxu1  ;;  %v656_v35 = vpop.f32.mrf.mxu0 }
 0x222   :  { %v723_v29 = vrot.slane %v676_v28, 6  ;;  %v2286_v28 = vld [vmem:[#allocation8 + $0x120] sm:$0xff] }
 0x224   :  { %v726_v36 = vsel %vm294_vm0, %v656_v35, %v723_v29  ;;  %v2289_v29 = vld [vmem:[#allocation8 + $0x128] sm:$0xff]  ;;  %v2304_v35 = vld [vmem:[#allocation8 + $0x110] sm:$0xff] }
 0x228   :  { %v696_v30 = vpop.f32.mrf.mxu2  ;;  %v716_v32 = vpop.f32.mrf.mxu3 }
 0x229   :  { %v724_v33 = vrot.slane %v696_v30, 4  ;;  %v725_v34 = vrot.slane %v716_v32, 2  ;;  %v2292_v30 = vld [vmem:[#allocation8 + $0x130] sm:$0xff]  ;;  %v2295_v32 = vld [vmem:[#allocation8 + $0x138] sm:$0xff] }
 0x22b   :  { %v727_v39 = vsel %vm296_vm3, %v724_v33, %v725_v34  ;;  %v2298_v33 = vld [vmem:[#allocation8 + $0x100] sm:$0xff]  ;;  %v2301_v34 = vld [vmem:[#allocation8 + $0x108] sm:$0xff] }
 0x22c   :  { %v728_v42 = vsel %vm298_vm4, %v726_v36, %v727_v39  ;;  %v2307_v36 = vld [vmem:[#allocation8 + $0x118] sm:$0xff]  ;;  %v2316_v39 = vld [vmem:[#allocation8 + $0xf0] sm:$0xff] }
 0x22d   :  { %v730_v43 = vadd.f32 %v728_v42, %v310_v38  ;;  %v2313_v38 = vld [vmem:[#allocation8 + $0xe8] sm:$0xff]  ;;  %v2319_v42 = vld [vmem:[#allocation8 + $0xf8] sm:$0xff] }
 0x22f   :  { %v731_v46 = vmul.f32 0.5, %v730_v43  ;;  %v736_v47 = vrot.slane %v730_v43, 2  ;;  %v745_v49 = vrot.slane %v730_v43, 6  ;;  %v742_v57 = vrot.slane %v730_v43, 4  ;;  %v2322_v43 = vld [vmem:[#allocation8 + $0xc0] sm:$0xff] }
 0x231   :  { %1403 = vtanh.f32 %v731_v46  ;;  %v738_v51 = vmul.f32 0.5, %v736_v47  ;;  %v747_v62 = vmul.f32 0.5, %v745_v49  ;;  %v2325_v46 = vld [vmem:[#allocation8 + $0xc8] sm:$0xff]  ;;  %v2328_v47 = vld [vmem:[#allocation8 + $0xd0] sm:$0xff]  ;;  %v2334_v49 = vld [vmem:[#allocation8 + $0xa0] sm:$0xff] }
 0x233   :  { %1405 = vtanh.f32 %v738_v51  ;;  %v2331_v51 = vld [vmem:[#allocation8 + $0xd8] sm:$0xff] }
 0x234   :  { %1407 = vtanh.f32 %v742_v57  ;;  %v2337_v57 = vld [vmem:[#allocation8 + $0xa8] sm:$0xff] }
 0x235   :  { %1409 = vtanh.f32 %v747_v62  ;;  %v2340_v62 = vld [vmem:[#allocation8 + $0xb0] sm:$0xff] }
 0x237   :  { %v1404_v45 = vpop.eup %1403 }
 0x238   :  { %v733_v40 = vadd.f32 1.0, %v1404_v45  ;;  %v2343_v45 = vld [vmem:[#allocation8 + $0xb8] sm:$0xff] }
 0x239   :  { %v1406_v59 = vpop.eup %1405 }
 0x23a   :  { %v734_v50 = vmul.f32 0.5, %v733_v40  ;;  %v740_v19 = vadd.f32 1.0, %v1406_v59  ;;  %v1408_v31 = vpop.eup %1407  ;;  %v2346_v40 = vld [vmem:[#allocation8 + $0x80] sm:$0xff]  ;;  %v2349_v59 = vld [vmem:[#allocation8 + $0x88] sm:$0xff] }
 0x23b   :  { %v1410_v53 = vpop.eup %1409  ;;  %2749 = vst [vmem:[#allocation24_spill] sm:$0xff] %v2346_v40 }
 0x23c   :  { %v741_v7 = vmul.f32 0.5, %v740_v19  ;;  %v752_v21 = vmul.f32 %v1408_v31, %v734_v50  ;;  %v749_v55 = vadd.f32 1.0, %v1410_v53  ;;  %2750 = vst [vmem:[#allocation21_spill] sm:$0xff] %v2349_v59  ;;  %v2352_v50 = vld [vmem:[#allocation8 + $0x90] sm:$0xff]  ;;  %v2355_v19 = vld [vmem:[#allocation8 + $0x98] sm:$0xff] }
 0x23d   :  { %2751 = vst [vmem:[#allocation15_spill] sm:$0xff] %v2352_v50  ;;  %v2362_v31 = vld [vmem:[#allocation8 + $0x70] sm:$0xff] }
 0x23e   :  { %v751_v1 = vmul.f32 %v741_v7, %v2139_v56  ;;  %v750_v58 = vmul.f32 0.5, %v749_v55  ;;  %v2229_v56 = vld [vmem:[#allocation8 + $0x1c8] sm:$0xff]  ;;  %2752 = vst [vmem:[#allocation16_spill] sm:$0xff] %v2355_v19  ;;  %v2372_v53 = vld [vmem:[#allocation8 + $0x50] sm:$0xff] }
 0x23f   :  { %v2359_v7 = vld [vmem:[#allocation8 + $0x68] sm:$0xff]  ;;  %2754 = vst [vmem:[#allocation25_spill] sm:$0xff] %v2362_v31  ;;  %v2380_v55 = vld [vmem:[#allocation8 + $0x30] sm:$0xff] }
 0x240   :  { %v2211_v54 = vadd.f32 %v752_v21, %v751_v1  ;;  %2753 = vst [vmem:[#allocation28_spill] sm:$0xff] %v2359_v7  ;;  %v2365_v1 = vld [vmem:[#allocation8 + $0x78] sm:$0xff]  ;;  %v2369_v21 = vld [vmem:[#allocation8 + $0x48] sm:$0xff] }
 0x241   :  { %2755 = vst [vmem:[#allocation17_spill] sm:$0xff] %v2365_v1 }
 0x242   :  { %1411 = vtanh.f32 %v2211_v54  ;;  %2756 = vst [vmem:[#allocation18_spill] sm:$0xff] %v2369_v21 }
 0x243   :  { %2757 = vst [vmem:[#allocation32_spill] sm:$0xff] %v2372_v53 }
 0x244   :  { %2759 = vst [vmem:[#allocation19_spill] sm:$0xff] %v2380_v55 }
 0x248   :  { %v1412_v0 = vpop.eup %1411 }
 0x249   :  { %v755_v48 = vmul.f32 %v1412_v0, %v750_v58  ;;  %v2388_v58 = vld [vmem:[#allocation8 + $0x10] sm:$0xff]  ;;  %v2391_v0 = vld [vmem:[#allocation8 + $0x18] sm:$0xff] }
 0x24a   :  { %2761 = vst [vmem:[#allocation36_spill] sm:$0xff] %v2388_v58 }
 0x24b   :  { %757 = vst [vmem:[#allocation10 + $0x4] sm:$0x3] %v755_v48  ;;  %774 = vmatmul.f32.vlgmr.msra.gmra.mxu0 %v755_v48  ;;  %794 = vmatmul.f32.vlgmr.msra.gmra.mxu1 %v755_v48 }
 0x24c   :  { %814 = vmatmul.f32.vlgmr.msra.gmra.mxu2 %v755_v48  ;;  %834 = vmatmul.f32.vlgmr.msra.gmra.mxu3 %v755_v48  ;;  %2762 = vst [vmem:[#allocation33_spill] sm:$0xff] %v2391_v0 }
 0x24d   :  { %996 = vmatpush.msra.mxu0 %v2214_v20  ;;  %1016 = vmatpush.msra.mxu1 %v2217_v63 }
 0x24e   :  { %1036 = vmatpush.msra.mxu2 %v2220_v44  ;;  %1056 = vmatpush.msra.mxu3 %v2223_v6 }
 0x24f   :  { %997 = vmatpush.msra.mxu0 %v2226_v52  ;;  %1017 = vmatpush.msra.mxu1 %v2229_v56 }
 0x250   :  { %1037 = vmatpush.msra.mxu2 %v2232_v18  ;;  %1057 = vmatpush.msra.mxu3 %v2235_v5 }
 0x251   :  { %998 = vmatpush.msra.mxu0 %v2238_v2  ;;  %1018 = vmatpush.msra.mxu1 %v2241_v41 }
 0x252   :  { %1038 = vmatpush.msra.mxu2 %v2244_v60  ;;  %1058 = vmatpush.msra.mxu3 %v2247_v61 }
 0x253   :  { %999 = vmatpush.msra.mxu0 %v2250_v3  ;;  %1019 = vmatpush.msra.mxu1 %v2253_v4 }
 0x254   :  { %1039 = vmatpush.msra.mxu2 %v2256_v9  ;;  %1059 = vmatpush.msra.mxu3 %v2259_v10 }
 0x255   :  { %1000 = vmatpush.msra.mxu0 %v2262_v11  ;;  %1020 = vmatpush.msra.mxu1 %v2265_v13 }
 0x256   :  { %1040 = vmatpush.msra.mxu2 %v2268_v14  ;;  %1060 = vmatpush.msra.mxu3 %v2271_v15 }
 0x257   :  { %1001 = vmatpush.msra.mxu0 %v2274_v22  ;;  %1021 = vmatpush.msra.mxu1 %v2277_v23 }
 0x258   :  { %1041 = vmatpush.msra.mxu2 %v2280_v26  ;;  %1061 = vmatpush.msra.mxu3 %v2283_v27 }
 0x259   :  { %1002 = vmatpush.msra.mxu0 %v2286_v28  ;;  %1022 = vmatpush.msra.mxu1 %v2289_v29 }
 0x25a   :  { %1042 = vmatpush.msra.mxu2 %v2292_v30  ;;  %1062 = vmatpush.msra.mxu3 %v2295_v32 }
 0x25b   :  { %1003 = vmatpush.msra.mxu0 %v2298_v33  ;;  %1023 = vmatpush.msra.mxu1 %v2301_v34 }
 0x25c   :  { %1043 = vmatpush.msra.mxu2 %v2304_v35  ;;  %1063 = vmatpush.msra.mxu3 %v2307_v36 }
 0x25d   :  { %1004 = vmatpush.msra.mxu0 %v2310_v37  ;;  %1024 = vmatpush.msra.mxu1 %v2313_v38 }
 0x25e   :  { %1044 = vmatpush.msra.mxu2 %v2316_v39  ;;  %1064 = vmatpush.msra.mxu3 %v2319_v42 }
 0x25f   :  { %1005 = vmatpush.msra.mxu0 %v2322_v43  ;;  %1025 = vmatpush.msra.mxu1 %v2325_v46 }
 0x260   :  { %1045 = vmatpush.msra.mxu2 %v2328_v47  ;;  %1065 = vmatpush.msra.mxu3 %v2331_v51 }
 0x261   :  { %1006 = vmatpush.msra.mxu0 %v2334_v49  ;;  %1026 = vmatpush.msra.mxu1 %v2337_v57 }
 0x262   :  { %1046 = vmatpush.msra.mxu2 %v2340_v62  ;;  %1066 = vmatpush.msra.mxu3 %v2343_v45 }
 0x263   :  { %1007 = vmatpush.msra.mxu0 %v2346_v40  ;;  %1027 = vmatpush.msra.mxu1 %v2349_v59 }
 0x264   :  { %1047 = vmatpush.msra.mxu2 %v2352_v50  ;;  %1067 = vmatpush.msra.mxu3 %v2355_v19 }
 0x265   :  { %1008 = vmatpush.msra.mxu0 %v2732_v8  ;;  %1028 = vmatpush.msra.mxu1 %v2359_v7  ;;  %v2375_v8 = vld [vmem:[#allocation8 + $0x58] sm:$0xff] }
 0x266   :  { %1048 = vmatpush.msra.mxu2 %v2362_v31  ;;  %1068 = vmatpush.msra.mxu3 %v2365_v1  ;;  %2758 = vst [vmem:[#allocation29_spill] sm:$0xff] %v2375_v8 }
 0x267   :  { %1009 = vmatpush.msra.mxu0 %v2736_v12  ;;  %1029 = vmatpush.msra.mxu1 %v2369_v21  ;;  %v2383_v12 = vld [vmem:[#allocation8 + $0x38] sm:$0xff] }
 0x268   :  { %1049 = vmatpush.msra.mxu2 %v2372_v53  ;;  %1069 = vmatpush.msra.mxu3 %v2375_v8  ;;  %2760 = vst [vmem:[#allocation20_spill] sm:$0xff] %v2383_v12 }
 0x269   :  { %1010 = vmatpush.msra.mxu0 %v2740_v16  ;;  %1030 = vmatpush.msra.mxu1 %v2741_v17 }
 0x26a   :  { %1050 = vmatpush.msra.mxu2 %v2380_v55  ;;  %1070 = vmatpush.msra.mxu3 %v2383_v12 }
 0x26b   :  { %1011 = vmatpush.msra.mxu0 %v2744_v24  ;;  %1031 = vmatpush.msra.mxu1 %v2745_v25  ;;  %v2763_v24 = vld [vmem:[#allocation44_spill] sm:$0xff] }
 0x26c   :  { %1051 = vmatpush.msra.mxu2 %v2388_v58  ;;  %1071 = vmatpush.msra.mxu3 %v2391_v0  ;;  %v314_v1 = vrot.slane %v2763_v24, 6 }
 0x2c8   :  { %v795_v16 = vpop.f32.mrf.mxu1  ;;  %v775_v21 = vpop.f32.mrf.mxu0 }
 0x2c9   :  { %v842_v17 = vrot.slane %v795_v16, 6 }
 0x2cb   :  { %v845_v12 = vsel %vm294_vm0, %v775_v21, %v842_v17 }
 0x2cf   :  { %v815_v48 = vpop.f32.mrf.mxu2  ;;  %v835_v55 = vpop.f32.mrf.mxu3 }
 0x2d0   :  { %v843_v8 = vrot.slane %v815_v48, 4  ;;  %v844_v53 = vrot.slane %v835_v55, 2 }
 0x2d2   :  { %v846_v25 = vsel %vm296_vm3, %v843_v8, %v844_v53 }
 0x2d3   :  { %v847_v31 = vsel %vm298_vm4, %v845_v12, %v846_v25  ;;  %v2450_v25 = vld [vmem:[#allocation8 + $0x60] sm:$0xff] }
 0x2d4   :  { %v849_v58 = vadd.f32 %v847_v31, %v314_v1  ;;  %2768 = vst [vmem:[#allocation22_spill] sm:$0xff] %v2450_v25 }
 0x2d6   :  { %v850_v7 = vmul.f32 0.5, %v849_v58  ;;  %v855_v19 = vrot.slane %v849_v58, 2  ;;  %v864_v50 = vrot.slane %v849_v58, 6  ;;  %v861_v16 = vrot.slane %v849_v58, 4 }
 0x2d8   :  { %1413 = vtanh.f32 %v850_v7  ;;  %v857_v0 = vmul.f32 0.5, %v855_v19  ;;  %v866_v59 = vmul.f32 0.5, %v864_v50 }
 0x2da   :  { %1415 = vtanh.f32 %v857_v0  ;;  %v2767_v0 = vld [vmem:[#allocation16_spill] sm:$0xff] }
 0x2db   :  { %1417 = vtanh.f32 %v861_v16  ;;  %v2769_v16 = vld [vmem:[#allocation28_spill] sm:$0xff] }
 0x2dc   :  { %1419 = vtanh.f32 %v866_v59  ;;  %v2766_v59 = vld [vmem:[#allocation15_spill] sm:$0xff] }
 0x2de   :  { %v1414_v48 = vpop.eup %1413 }
 0x2df   :  { %v852_v55 = vadd.f32 1.0, %v1414_v48  ;;  %v2770_v48 = vld [vmem:[#allocation25_spill] sm:$0xff] }
 0x2e0   :  { %v1416_v40 = vpop.eup %1415 }
 0x2e1   :  { %v853_v21 = vmul.f32 0.5, %v852_v55  ;;  %v859_v17 = vadd.f32 1.0, %v1416_v40  ;;  %v1418_v53 = vpop.eup %1417  ;;  %v2765_v40 = vld [vmem:[#allocation21_spill] sm:$0xff] }
 0x2e2   :  { %v1420_v1 = vpop.eup %1419  ;;  %v2771_v55 = vld [vmem:[#allocation17_spill] sm:$0xff] }
 0x2e3   :  { %v860_v24 = vmul.f32 0.5, %v859_v17  ;;  %v871_v31 = vmul.f32 %v1418_v53, %v853_v21  ;;  %v868_v19 = vadd.f32 1.0, %v1420_v1  ;;  %v2456_v21 = vld [vmem:[#allocation8 + $0x40] sm:$0xff]  ;;  %v2773_v17 = vld [vmem:[#allocation18_spill] sm:$0xff]  ;;  %v2778_v1 = vld [vmem:[#allocation19_spill] sm:$0xff] }
 0x2e4   :  { %2772 = vst [vmem:[#allocation23_spill] sm:$0xff] %v2456_v21  ;;  %v2775_v53 = vld [vmem:[#allocation29_spill] sm:$0xff] }
 0x2e5   :  { %v870_v8 = vmul.f32 %v860_v24, %v2211_v54  ;;  %v869_v7 = vmul.f32 0.5, %v868_v19  ;;  %v2764_v54 = vld [vmem:[#allocation24_spill] sm:$0xff] }
 0x2e6   :  { %v2774_v24 = vld [vmem:[#allocation32_spill] sm:$0xff] }
 0x2e7   :  { %v2399_v12 = vadd.f32 %v871_v31, %v870_v8  ;;  %v2462_v8 = vld [vmem:[#allocation8 + $0x20] sm:$0xff]  ;;  %v2465_v31 = vld [vmem:[#allocation8 + $0x28] sm:$0xff]  ;;  %v2779_v19 = vld [vmem:[#allocation20_spill] sm:$0xff] }
 0x2e8   :  { %2776 = vst [vmem:[#allocation38_spill] sm:$0xff] %v2462_v8 }
 0x2e9   :  { %1421 = vtanh.f32 %v2399_v12  ;;  %2777 = vst [vmem:[#allocation37_spill] sm:$0xff] %v2465_v31 }
 0x2ef   :  { %v1422_v50 = vpop.eup %1421 }
 0x2f0   :  { %v874_v58 = vmul.f32 %v1422_v50, %v869_v7  ;;  %v2470_v7 = vld [vmem:[#allocation8] sm:$0xff]  ;;  %v2473_v50 = vld [vmem:[#allocation8 + $0x8] sm:$0xff] }
 0x2f1   :  { %2780 = vst [vmem:[#allocation26_spill] sm:$0xff] %v2470_v7 }
 0x2f2   :  { %876 = vst [vmem:[#allocation10 + $0x6] sm:$0x3] %v874_v58  ;;  %893 = vmatmul.f32.vlgmr.msrb.gmra.mxu0 %v874_v58  ;;  %913 = vmatmul.f32.vlgmr.msrb.gmra.mxu1 %v874_v58 }
 0x2f3   :  { %933 = vmatmul.f32.vlgmr.msrb.gmra.mxu2 %v874_v58  ;;  %953 = vmatmul.f32.vlgmr.msrb.gmra.mxu3 %v874_v58  ;;  %2781 = vst [vmem:[#allocation27_spill] sm:$0xff] %v2473_v50  ;;  %v2782_v58 = vld [vmem:[#allocation36_spill] sm:$0xff] }
 0x2f4   :  { %1115 = vmatpush.msrb.mxu0 %v2214_v20  ;;  %1135 = vmatpush.msrb.mxu1 %v2217_v63 }
 0x2f5   :  { %1155 = vmatpush.msrb.mxu2 %v2220_v44  ;;  %1175 = vmatpush.msrb.mxu3 %v2223_v6 }
 0x2f6   :  { %1116 = vmatpush.msrb.mxu0 %v2226_v52  ;;  %1136 = vmatpush.msrb.mxu1 %v2229_v56 }
 0x2f7   :  { %1156 = vmatpush.msrb.mxu2 %v2232_v18  ;;  %1176 = vmatpush.msrb.mxu3 %v2235_v5 }
 0x2f8   :  { %1117 = vmatpush.msrb.mxu0 %v2238_v2  ;;  %1137 = vmatpush.msrb.mxu1 %v2241_v41 }
 0x2f9   :  { %1157 = vmatpush.msrb.mxu2 %v2244_v60  ;;  %1177 = vmatpush.msrb.mxu3 %v2247_v61 }
 0x2fa   :  { %1118 = vmatpush.msrb.mxu0 %v2250_v3  ;;  %1138 = vmatpush.msrb.mxu1 %v2253_v4 }
 0x2fb   :  { %1158 = vmatpush.msrb.mxu2 %v2256_v9  ;;  %1178 = vmatpush.msrb.mxu3 %v2259_v10 }
 0x2fc   :  { %1119 = vmatpush.msrb.mxu0 %v2262_v11  ;;  %1139 = vmatpush.msrb.mxu1 %v2265_v13 }
 0x2fd   :  { %1159 = vmatpush.msrb.mxu2 %v2268_v14  ;;  %1179 = vmatpush.msrb.mxu3 %v2271_v15 }
 0x2fe   :  { %1120 = vmatpush.msrb.mxu0 %v2274_v22  ;;  %1140 = vmatpush.msrb.mxu1 %v2277_v23 }
 0x2ff   :  { %1160 = vmatpush.msrb.mxu2 %v2280_v26  ;;  %1180 = vmatpush.msrb.mxu3 %v2283_v27 }
 0x300   :  { %1121 = vmatpush.msrb.mxu0 %v2286_v28  ;;  %1141 = vmatpush.msrb.mxu1 %v2289_v29 }
 0x301   :  { %1161 = vmatpush.msrb.mxu2 %v2292_v30  ;;  %1181 = vmatpush.msrb.mxu3 %v2295_v32 }
 0x302   :  { %1122 = vmatpush.msrb.mxu0 %v2298_v33  ;;  %1142 = vmatpush.msrb.mxu1 %v2301_v34 }
 0x303   :  { %1162 = vmatpush.msrb.mxu2 %v2304_v35  ;;  %1182 = vmatpush.msrb.mxu3 %v2307_v36 }
 0x304   :  { %1123 = vmatpush.msrb.mxu0 %v2310_v37  ;;  %1143 = vmatpush.msrb.mxu1 %v2313_v38 }
 0x305   :  { %1163 = vmatpush.msrb.mxu2 %v2316_v39  ;;  %1183 = vmatpush.msrb.mxu3 %v2319_v42 }
 0x306   :  { %1124 = vmatpush.msrb.mxu0 %v2322_v43  ;;  %1144 = vmatpush.msrb.mxu1 %v2325_v46 }
 0x307   :  { %1164 = vmatpush.msrb.mxu2 %v2328_v47  ;;  %1184 = vmatpush.msrb.mxu3 %v2331_v51 }
 0x308   :  { %1125 = vmatpush.msrb.mxu0 %v2334_v49  ;;  %1145 = vmatpush.msrb.mxu1 %v2337_v57 }
 0x309   :  { %1165 = vmatpush.msrb.mxu2 %v2340_v62  ;;  %1185 = vmatpush.msrb.mxu3 %v2343_v45 }
 0x30a   :  { %1126 = vmatpush.msrb.mxu0 %v2764_v54  ;;  %1146 = vmatpush.msrb.mxu1 %v2765_v40 }
 0x30b   :  { %1166 = vmatpush.msrb.mxu2 %v2766_v59  ;;  %1186 = vmatpush.msrb.mxu3 %v2767_v0 }
 0x30c   :  { %1127 = vmatpush.msrb.mxu0 %v2450_v25  ;;  %1147 = vmatpush.msrb.mxu1 %v2769_v16  ;;  %v2784_v16 = vld [vmem:[#allocation45_spill] sm:$0xff] }
 0x30d   :  { %1167 = vmatpush.msrb.mxu2 %v2770_v48  ;;  %1187 = vmatpush.msrb.mxu3 %v2771_v55 }
 0x30e   :  { %1128 = vmatpush.msrb.mxu0 %v2456_v21  ;;  %1148 = vmatpush.msrb.mxu1 %v2773_v17 }
 0x30f   :  { %1168 = vmatpush.msrb.mxu2 %v2774_v24  ;;  %1188 = vmatpush.msrb.mxu3 %v2775_v53  ;;  %v2783_v53 = vld [vmem:[#allocation33_spill] sm:$0xff] }
 0x310   :  { %1129 = vmatpush.msrb.mxu0 %v2462_v8  ;;  %1149 = vmatpush.msrb.mxu1 %v2465_v31 }
 0x311   :  { %1169 = vmatpush.msrb.mxu2 %v2778_v1  ;;  %1189 = vmatpush.msrb.mxu3 %v2779_v19 }
 0x312   :  { %1130 = vmatpush.msrb.mxu0 %v2470_v7  ;;  %1150 = vmatpush.msrb.mxu1 %v2473_v50 }
 0x313   :  { %1170 = vmatpush.msrb.mxu2 %v2782_v58  ;;  %1190 = vmatpush.msrb.mxu3 %v2783_v53 }
 0x36f   :  { %v914_v8 = vpop.f32.mrf.mxu1  ;;  %v894_v55 = vpop.f32.mrf.mxu0 }
 0x370   :  { %v961_v24 = vrot.slane %v914_v8, 6 }
 0x372   :  { %v964_v19 = vsel %vm294_vm0, %v894_v55, %v961_v24 }
 0x376   :  { %v934_v17 = vpop.f32.mrf.mxu2  ;;  %v954_v31 = vpop.f32.mrf.mxu3 }
 0x377   :  { %v962_v21 = vrot.slane %v934_v17, 4  ;;  %v963_v1 = vrot.slane %v954_v31, 2 }
 0x379   :  { %v965_v48 = vsel %vm296_vm3, %v962_v21, %v963_v1 }
 0x37a   :  { %v966_v7 = vsel %vm298_vm4, %v964_v19, %v965_v48 }
 0x37b   :  { %v968_v25 = vadd.f32 %v966_v7, %v2784_v16 }
 0x37d   :  { %v969_v50 = vmul.f32 0.5, %v968_v25  ;;  %v974_v0 = vrot.slane %v968_v25, 2  ;;  %v983_v53 = vrot.slane %v968_v25, 6  ;;  %v980_v8 = vrot.slane %v968_v25, 4 }
 0x37f   :  { %1423 = vtanh.f32 %v969_v50  ;;  %v976_v58 = vmul.f32 0.5, %v974_v0  ;;  %v985_v59 = vmul.f32 0.5, %v983_v53 }
 0x381   :  { %1425 = vtanh.f32 %v976_v58 }
 0x382   :  { %1427 = vtanh.f32 %v980_v8 }
 0x383   :  { %1429 = vtanh.f32 %v985_v59 }
 0x385   :  { %v1424_v40 = vpop.eup %1423 }
 0x386   :  { %v971_v17 = vadd.f32 1.0, %v1424_v40 }
 0x387   :  { %v1426_v31 = vpop.eup %1425 }
 0x388   :  { %v972_v54 = vmul.f32 0.5, %v971_v17  ;;  %v978_v55 = vadd.f32 1.0, %v1426_v31  ;;  %v1428_v24 = vpop.eup %1427 }
 0x389   :  { %v1430_v1 = vpop.eup %1429 }
 0x38a   :  { %v979_v21 = vmul.f32 0.5, %v978_v55  ;;  %v990_v16 = vmul.f32 %v1428_v24, %v972_v54  ;;  %v987_v0 = vadd.f32 1.0, %v1430_v1 }
 0x38c   :  { %v989_v48 = vmul.f32 %v979_v21, %v2399_v12  ;;  %v988_v25 = vmul.f32 0.5, %v987_v0 }
 0x38e   :  { %v2483_v19 = vadd.f32 %v990_v16, %v989_v48 }
 0x390   :  { %1431 = vtanh.f32 %v2483_v19 }
 0x396   :  { %v1432_v53 = vpop.eup %1431 }
 0x397   :  { %v993_v7 = vmul.f32 %v1432_v53, %v988_v25  ;;  %v2806_v53 = vld [vmem:[#allocation47_spill] sm:$0xff] }
 0x399   :  { %995 = vst [vmem:[#allocation10 + $0x8] sm:$0x3] %v993_v7  ;;  %1012 = vmatmul.f32.vlgmr.msra.gmra.mxu0 %v993_v7  ;;  %1032 = vmatmul.f32.vlgmr.msra.gmra.mxu1 %v993_v7 }
 0x39a   :  { %1052 = vmatmul.f32.vlgmr.msra.gmra.mxu2 %v993_v7  ;;  %1072 = vmatmul.f32.vlgmr.msra.gmra.mxu3 %v993_v7  ;;  %v325_v7 = vrot.slane %v2806_v53, 4 }
 0x39b   :  { %1234 = vmatpush.msra.mxu0 %v2214_v20  ;;  %1254 = vmatpush.msra.mxu1 %v2217_v63  ;;  %v2785_v20 = vld [vmem:[#allocation24_spill] sm:$0xff]  ;;  %v2786_v63 = vld [vmem:[#allocation21_spill] sm:$0xff] }
 0x39c   :  { %1274 = vmatpush.msra.mxu2 %v2220_v44  ;;  %1294 = vmatpush.msra.mxu3 %v2223_v6  ;;  %v2787_v44 = vld [vmem:[#allocation15_spill] sm:$0xff]  ;;  %v2788_v6 = vld [vmem:[#allocation16_spill] sm:$0xff] }
 0x39d   :  { %1235 = vmatpush.msra.mxu0 %v2226_v52  ;;  %1255 = vmatpush.msra.mxu1 %v2229_v56  ;;  %v2789_v52 = vld [vmem:[#allocation22_spill] sm:$0xff]  ;;  %v2790_v56 = vld [vmem:[#allocation28_spill] sm:$0xff] }
 0x39e   :  { %1275 = vmatpush.msra.mxu2 %v2232_v18  ;;  %1295 = vmatpush.msra.mxu3 %v2235_v5  ;;  %v2791_v18 = vld [vmem:[#allocation25_spill] sm:$0xff] }
 0x39f   :  { %1236 = vmatpush.msra.mxu0 %v2238_v2  ;;  %1256 = vmatpush.msra.mxu1 %v2241_v41  ;;  %v2792_v5 = vld [vmem:[#allocation17_spill] sm:$0xff]  ;;  %v2793_v2 = vld [vmem:[#allocation23_spill] sm:$0xff]  ;;  %v2794_v41 = vld [vmem:[#allocation18_spill] sm:$0xff] }
 0x3a0   :  { %1276 = vmatpush.msra.mxu2 %v2244_v60  ;;  %1296 = vmatpush.msra.mxu3 %v2247_v61  ;;  %v2795_v60 = vld [vmem:[#allocation32_spill] sm:$0xff]  ;;  %v2796_v61 = vld [vmem:[#allocation29_spill] sm:$0xff] }
 0x3a1   :  { %1237 = vmatpush.msra.mxu0 %v2250_v3  ;;  %1257 = vmatpush.msra.mxu1 %v2253_v4  ;;  %v2797_v3 = vld [vmem:[#allocation38_spill] sm:$0xff]  ;;  %v2798_v4 = vld [vmem:[#allocation37_spill] sm:$0xff] }
 0x3a2   :  { %1277 = vmatpush.msra.mxu2 %v2256_v9  ;;  %1297 = vmatpush.msra.mxu3 %v2259_v10  ;;  %v2799_v9 = vld [vmem:[#allocation19_spill] sm:$0xff]  ;;  %v2800_v10 = vld [vmem:[#allocation20_spill] sm:$0xff] }
 0x3a3   :  { %1238 = vmatpush.msra.mxu0 %v2262_v11  ;;  %1258 = vmatpush.msra.mxu1 %v2265_v13  ;;  %v2801_v11 = vld [vmem:[#allocation26_spill] sm:$0xff]  ;;  %v2802_v13 = vld [vmem:[#allocation27_spill] sm:$0xff] }
 0x3a4   :  { %1278 = vmatpush.msra.mxu2 %v2268_v14  ;;  %1298 = vmatpush.msra.mxu3 %v2271_v15  ;;  %v2803_v14 = vld [vmem:[#allocation36_spill] sm:$0xff]  ;;  %v2804_v15 = vld [vmem:[#allocation33_spill] sm:$0xff] }
 0x3a5   :  { %1239 = vmatpush.msra.mxu0 %v2274_v22  ;;  %1259 = vmatpush.msra.mxu1 %v2277_v23 }
 0x3a6   :  { %1279 = vmatpush.msra.mxu2 %v2280_v26  ;;  %1299 = vmatpush.msra.mxu3 %v2283_v27 }
 0x3a7   :  { %1240 = vmatpush.msra.mxu0 %v2286_v28  ;;  %1260 = vmatpush.msra.mxu1 %v2289_v29 }
 0x3a8   :  { %1280 = vmatpush.msra.mxu2 %v2292_v30  ;;  %1300 = vmatpush.msra.mxu3 %v2295_v32 }
 0x3a9   :  { %1241 = vmatpush.msra.mxu0 %v2298_v33  ;;  %1261 = vmatpush.msra.mxu1 %v2301_v34  ;;  %v2805_v33 = vld [vmem:[#allocation46_spill] sm:$0xff] }
 0x3aa   :  { %1281 = vmatpush.msra.mxu2 %v2304_v35  ;;  %1301 = vmatpush.msra.mxu3 %v2307_v36  ;;  %v321_v34 = vrot.slane %v2805_v33, 2 }
 0x3ab   :  { %1242 = vmatpush.msra.mxu0 %v2310_v37  ;;  %1262 = vmatpush.msra.mxu1 %v2313_v38 }
 0x3ac   :  { %1282 = vmatpush.msra.mxu2 %v2316_v39  ;;  %1302 = vmatpush.msra.mxu3 %v2319_v42 }
 0x3ad   :  { %1243 = vmatpush.msra.mxu0 %v2322_v43  ;;  %1263 = vmatpush.msra.mxu1 %v2325_v46 }
 0x3ae   :  { %1283 = vmatpush.msra.mxu2 %v2328_v47  ;;  %1303 = vmatpush.msra.mxu3 %v2331_v51 }
 0x3af   :  { %1244 = vmatpush.msra.mxu0 %v2334_v49  ;;  %1264 = vmatpush.msra.mxu1 %v2337_v57 }
 0x3b0   :  { %1284 = vmatpush.msra.mxu2 %v2340_v62  ;;  %1304 = vmatpush.msra.mxu3 %v2343_v45 }
 0x3b1   :  { %1245 = vmatpush.msra.mxu0 %v2785_v20  ;;  %1265 = vmatpush.msra.mxu1 %v2786_v63 }
 0x3b2   :  { %1285 = vmatpush.msra.mxu2 %v2787_v44  ;;  %1305 = vmatpush.msra.mxu3 %v2788_v6 }
 0x3b3   :  { %1246 = vmatpush.msra.mxu0 %v2789_v52  ;;  %1266 = vmatpush.msra.mxu1 %v2790_v56 }
 0x3b4   :  { %1286 = vmatpush.msra.mxu2 %v2791_v18  ;;  %1306 = vmatpush.msra.mxu3 %v2792_v5 }
 0x3b5   :  { %1247 = vmatpush.msra.mxu0 %v2793_v2  ;;  %1267 = vmatpush.msra.mxu1 %v2794_v41 }
 0x3b6   :  { %1287 = vmatpush.msra.mxu2 %v2795_v60  ;;  %1307 = vmatpush.msra.mxu3 %v2796_v61 }
 0x3b7   :  { %1248 = vmatpush.msra.mxu0 %v2797_v3  ;;  %1268 = vmatpush.msra.mxu1 %v2798_v4 }
 0x3b8   :  { %1288 = vmatpush.msra.mxu2 %v2799_v9  ;;  %1308 = vmatpush.msra.mxu3 %v2800_v10 }
 0x3b9   :  { %1249 = vmatpush.msra.mxu0 %v2801_v11  ;;  %1269 = vmatpush.msra.mxu1 %v2802_v13 }
 0x3ba   :  { %1289 = vmatpush.msra.mxu2 %v2803_v14  ;;  %1309 = vmatpush.msra.mxu3 %v2804_v15 }
 0x416   :  { %v1033_v22 = vpop.f32.mrf.mxu1  ;;  %v1013_v30 = vpop.f32.mrf.mxu0 }
 0x417   :  { %v1080_v23 = vrot.slane %v1033_v22, 6 }
 0x419   :  { %v1083_v32 = vsel %vm294_vm0, %v1013_v30, %v1080_v23 }
 0x41d   :  { %v1053_v26 = vpop.f32.mrf.mxu2  ;;  %v1073_v27 = vpop.f32.mrf.mxu3 }
 0x41e   :  { %v1081_v28 = vrot.slane %v1053_v26, 4  ;;  %v1082_v29 = vrot.slane %v1073_v27, 2 }
 0x420   :  { %v1084_v35 = vsel %vm296_vm3, %v1081_v28, %v1082_v29 }
 0x421   :  { %v1085_v36 = vsel %vm298_vm4, %v1083_v32, %v1084_v35 }
 0x422   :  { %v1087_v37 = vadd.f32 %v1085_v36, %v321_v34 }
 0x424   :  { %v1088_v38 = vmul.f32 0.5, %v1087_v37  ;;  %v1093_v39 = vrot.slane %v1087_v37, 2  ;;  %v1102_v43 = vrot.slane %v1087_v37, 6  ;;  %v1099_v46 = vrot.slane %v1087_v37, 4  ;;  %v2807_v37 = vld [vmem:[#allocation48_spill] sm:$0xff] }
 0x426   :  { %1433 = vtanh.f32 %v1088_v38  ;;  %v1095_v42 = vmul.f32 0.5, %v1093_v39  ;;  %v1104_v47 = vmul.f32 0.5, %v1102_v43  ;;  %v329_v38 = vrot.slane %v2807_v37, 6 }
 0x428   :  { %1435 = vtanh.f32 %v1095_v42 }
 0x429   :  { %1437 = vtanh.f32 %v1099_v46 }
 0x42a   :  { %1439 = vtanh.f32 %v1104_v47 }
 0x42c   :  { %v1434_v51 = vpop.eup %1433 }
 0x42d   :  { %v1090_v49 = vadd.f32 1.0, %v1434_v51 }
 0x42e   :  { %v1436_v57 = vpop.eup %1435 }
 0x42f   :  { %v1091_v62 = vmul.f32 0.5, %v1090_v49  ;;  %v1097_v45 = vadd.f32 1.0, %v1436_v57  ;;  %v1438_v54 = vpop.eup %1437 }
 0x430   :  { %v1440_v50 = vpop.eup %1439 }
 0x431   :  { %v1098_v12 = vmul.f32 0.5, %v1097_v45  ;;  %v1109_v59 = vmul.f32 %v1438_v54, %v1091_v62  ;;  %v1106_v8 = vadd.f32 1.0, %v1440_v50 }
 0x433   :  { %v1108_v40 = vmul.f32 %v1098_v12, %v2483_v19  ;;  %v1107_v17 = vmul.f32 0.5, %v1106_v8 }
 0x435   :  { %v1110_v58 = vadd.f32 %v1109_v59, %v1108_v40 }
 0x437   :  { %1441 = vtanh.f32 %v1110_v58 }
 0x43d   :  { %v1442_v31 = vpop.eup %1441 }
 0x43e   :  { %v1112_v55 = vmul.f32 %v1442_v31, %v1107_v17 }
 0x440   :  { %1114 = vst [vmem:[#allocation10 + $0xa] sm:$0x3] %v1112_v55  ;;  %1131 = vmatmul.f32.vlgmr.msrb.gmra.mxu0 %v1112_v55  ;;  %1151 = vmatmul.f32.vlgmr.msrb.gmra.mxu1 %v1112_v55 }
 0x441   :  { %1171 = vmatmul.f32.vlgmr.msrb.gmra.mxu2 %v1112_v55  ;;  %1191 = vmatmul.f32.vlgmr.msrb.gmra.mxu3 %v1112_v55 }
 0x4bd   :  { %v1152_v21 = vpop.f32.mrf.mxu1  ;;  %v1132_v19 = vpop.f32.mrf.mxu0 }
 0x4be   :  { %v1199_v24 = vrot.slane %v1152_v21, 6 }
 0x4c0   :  { %v1202_v25 = vsel %vm294_vm0, %v1132_v19, %v1199_v24 }
 0x4c4   :  { %v1172_v48 = vpop.f32.mrf.mxu2  ;;  %v1192_v16 = vpop.f32.mrf.mxu3 }
 0x4c5   :  { %v1200_v1 = vrot.slane %v1172_v48, 4  ;;  %v1201_v0 = vrot.slane %v1192_v16, 2 }
 0x4c7   :  { %v1203_v20 = vsel %vm296_vm3, %v1200_v1, %v1201_v0 }
 0x4c8   :  { %v1204_v63 = vsel %vm298_vm4, %v1202_v25, %v1203_v20 }
 0x4c9   :  { %v1206_v44 = vadd.f32 %v1204_v63, %v325_v7 }
 0x4cb   :  { %v1207_v6 = vmul.f32 0.5, %v1206_v44  ;;  %v1212_v52 = vrot.slane %v1206_v44, 2  ;;  %v1221_v18 = vrot.slane %v1206_v44, 6  ;;  %v1218_v5 = vrot.slane %v1206_v44, 4 }
 0x4cd   :  { %1443 = vtanh.f32 %v1207_v6  ;;  %v1214_v56 = vmul.f32 0.5, %v1212_v52  ;;  %v1223_v2 = vmul.f32 0.5, %v1221_v18 }
 0x4cf   :  { %1445 = vtanh.f32 %v1214_v56 }
 0x4d0   :  { %1447 = vtanh.f32 %v1218_v5 }
 0x4d1   :  { %1449 = vtanh.f32 %v1223_v2 }
 0x4d3   :  { %v1444_v41 = vpop.eup %1443 }
 0x4d4   :  { %v1209_v60 = vadd.f32 1.0, %v1444_v41 }
 0x4d5   :  { %v1446_v61 = vpop.eup %1445 }
 0x4d6   :  { %v1210_v3 = vmul.f32 0.5, %v1209_v60  ;;  %v1216_v4 = vadd.f32 1.0, %v1446_v61  ;;  %v1448_v10 = vpop.eup %1447 }
 0x4d7   :  { %v1450_v14 = vpop.eup %1449 }
 0x4d8   :  { %v1217_v9 = vmul.f32 0.5, %v1216_v4  ;;  %v1228_v13 = vmul.f32 %v1448_v10, %v1210_v3  ;;  %v1225_v22 = vadd.f32 1.0, %v1450_v14 }
 0x4da   :  { %v1227_v11 = vmul.f32 %v1217_v9, %v1110_v58  ;;  %v1226_v23 = vmul.f32 0.5, %v1225_v22 }
 0x4dc   :  { %v1229_v15 = vadd.f32 %v1228_v13, %v1227_v11 }
 0x4de   :  { %1451 = vtanh.f32 %v1229_v15 }
 0x4e4   :  { %v1452_v26 = vpop.eup %1451 }
 0x4e5   :  { %v1231_v27 = vmul.f32 %v1452_v26, %v1226_v23 }
 0x4e7   :  { %1233 = vst [vmem:[#allocation10 + $0xc] sm:$0x3] %v1231_v27  ;;  %1250 = vmatmul.f32.vlgmr.msra.gmra.mxu0 %v1231_v27  ;;  %1270 = vmatmul.f32.vlgmr.msra.gmra.mxu1 %v1231_v27 }
 0x4e8   :  { %1290 = vmatmul.f32.vlgmr.msra.gmra.mxu2 %v1231_v27  ;;  %1310 = vmatmul.f32.vlgmr.msra.gmra.mxu3 %v1231_v27 }
 0x564   :  { %v1271_v28 = vpop.f32.mrf.mxu1  ;;  %v1251_v35 = vpop.f32.mrf.mxu0 }
 0x565   :  { %v1318_v29 = vrot.slane %v1271_v28, 6 }
 0x567   :  { %v1321_v36 = vsel %vm294_vm0, %v1251_v35, %v1318_v29 }
 0x56b   :  { %v1291_v30 = vpop.f32.mrf.mxu2  ;;  %v1311_v32 = vpop.f32.mrf.mxu3 }
 0x56c   :  { %v1319_v33 = vrot.slane %v1291_v30, 4  ;;  %v1320_v34 = vrot.slane %v1311_v32, 2 }
 0x56e   :  { %v1322_v39 = vsel %vm296_vm3, %v1319_v33, %v1320_v34 }
 0x56f   :  { %v1323_v42 = vsel %vm298_vm4, %v1321_v36, %v1322_v39 }
 0x570   :  { %v1325_v43 = vadd.f32 %v1323_v42, %v329_v38 }
 0x572   :  { %v1326_v46 = vmul.f32 0.5, %v1325_v43  ;;  %v1331_v47 = vrot.slane %v1325_v43, 2  ;;  %v1340_v49 = vrot.slane %v1325_v43, 6  ;;  %v1337_v57 = vrot.slane %v1325_v43, 4 }
 0x574   :  { %1453 = vtanh.f32 %v1326_v46  ;;  %v1333_v51 = vmul.f32 0.5, %v1331_v47  ;;  %v1342_v62 = vmul.f32 0.5, %v1340_v49 }
 0x576   :  { %1455 = vtanh.f32 %v1333_v51 }
 0x577   :  { %1457 = vtanh.f32 %v1337_v57 }
 0x578   :  { %1459 = vtanh.f32 %v1342_v62 }
 0x57a   :  { %v1454_v45 = vpop.eup %1453 }
 0x57b   :  { %v1328_v12 = vadd.f32 1.0, %v1454_v45 }
 0x57c   :  { %v1456_v54 = vpop.eup %1455 }
 0x57d   :  { %v1329_v40 = vmul.f32 0.5, %v1328_v12  ;;  %v1335_v59 = vadd.f32 1.0, %v1456_v54  ;;  %v1458_v58 = vpop.eup %1457 }
 0x57e   :  { %v1460_v31 = vpop.eup %1459 }
 0x57f   :  { %v1336_v50 = vmul.f32 0.5, %v1335_v59  ;;  %v1347_v17 = vmul.f32 %v1458_v58, %v1329_v40  ;;  %v1344_v21 = vadd.f32 1.0, %v1460_v31 }
 0x581   :  { %v1346_v8 = vmul.f32 %v1336_v50, %v1229_v15  ;;  %v1345_v24 = vmul.f32 0.5, %v1344_v21 }
 0x583   :  { %v1348_v55 = vadd.f32 %v1347_v17, %v1346_v8 }
 0x585   :  { %1461 = vtanh.f32 %v1348_v55 }
 0x58b   :  { %v1462_v48 = vpop.eup %1461 }
 0x58c   :  { %v1350_v16 = vmul.f32 %v1462_v48, %v1345_v24 }
 0x58e   :  { %1352 = vst [vmem:[#allocation10 + $0xe] sm:$0x3] %v1350_v16 }
 0x58f   :  { %1365 = dma.vmem_to_hbm [thread:$0]  %s1358_s3, 256, %s1360_s12, [#allocation4], %s1657_s24, %s1657_s24, %s1659_s29  }
 0x590   :  { %1653 = dma.done.wait [#allocation4], 256  }
 0x591   :  { %1654 = vsyncadd [#allocation4], 4294967040 }
 0x592   :  { %1370 = vsyncpa [#allocation3], 1 }
 0x593   :  { %1371 = vsyncpa [#allocation6], 1 }
 0x594   :  { %1372 = vsyncpa [#allocation9], 1 }
 0x595   :  { %1373 = vsyncpa [#allocation4], 1 }

</bundles_post_ra>
